<compile_context>
chip_gen: v6e
topology: v6e:2x2x1
jax: 0.10.0
libtpu: 0.0.40
codegen_flags: <defaults>
</compile_context>

<pallas_src>
import numpy as np

import jax
import jax.numpy as jnp
from jax import lax
from jax.experimental import pallas as pl
from jax.experimental.pallas import tpu as pltpu

# ---- Module hyperparameters (consistent with the PyTorch __init__) ----------
# Attention(dim=32, num_heads=4, attention_type='nystrom',
#           seq_len=16, num_landmarks=4, kernel_size=3), qkv_bias=False.
DIM = 32
NUM_HEADS = 4
HEAD_DIM = DIM // NUM_HEADS
SEQ_LEN = 16
NUM_LANDMARKS = 4
KERNEL_SIZE = 3
B = 2
N = SEQ_LEN + 1                     # CLS token + seq_len patches
SCALE = HEAD_DIM ** (-0.5)
SEG = SEQ_LEN // NUM_LANDMARKS
L1 = NUM_LANDMARKS + 1
N_ITER = 6

WIDE = B * DIM                      # 64 : lanes pack (batch, head, head_dim)
BH = B * NUM_HEADS                  # 8
LBH = BH * L1                       # 40 : sublanes pack (batch, head, landmark)

# ---- constant-slab layout (one (SLAB_ROWS, 128) f32 input, one DMA) ---------
R_LMASK = 0        # rows   0: 40, lanes 0:128  lane mask, duplicated to 128 wide
R_BD5   = 40       # rows  40: 80, lanes 0: 40  5x5 diagonal block-of-ones pattern
R_EYE   = 80       # rows  80:120, lanes 0: 40  40x40 identity (NS iteration-0 peel)
R_NEG   = 120      # rows 120:160, lanes 0: 40  (bd5 - 1) * 1e30 off-block mask
R_P8    = 160      # rows 160:200, lanes 0: 17  landmark pooling matrix, tiled x8
R_TAPS  = 200      # rows 200:208, lanes 0: 64  per-lane conv taps (runtime, 3 rows)
SLAB_ROWS = 208


def _static_slab():
    # landmark pooling matrix P: row 0 = CLS token, row l+1 = mean of segment l
    P = np.zeros((L1, N), np.float32)
    P[0, 0] = 1.0
    for l in range(NUM_LANDMARKS):
        P[l + 1, 1 + l * SEG: 1 + (l + 1) * SEG] = 1.0 / SEG
    p8 = np.tile(P, (BH, 1))                                        # (40, 17)

    j = np.arange(LBH)
    lane = np.arange(WIDE)
    # row-block (b,h) index == lane-block (b,h) index
    lmask = (j[:, None] // L1 == lane[None, :] // HEAD_DIM).astype(np.float32)
    # 5x5 diagonal blocks of ones (per-head block pattern)
    bd5 = (j[:, None] // L1 == j[None, :] // L1).astype(np.float32)

    slab = np.zeros((R_TAPS, 128), np.float32)      # static part (taps appended later)
    slab[R_LMASK:R_LMASK + LBH, 0:WIDE] = lmask
    slab[R_LMASK:R_LMASK + LBH, WIDE:2 * WIDE] = lmask
    slab[R_BD5:R_BD5 + LBH, 0:LBH] = bd5
    slab[R_EYE:R_EYE + LBH, 0:LBH] = np.eye(LBH, dtype=np.float32)
    slab[R_NEG:R_NEG + LBH, 0:LBH] = (bd5 - 1.0) * 1e30
    slab[R_P8:R_P8 + LBH, 0:N] = p8
    return slab


_SLAB_STATIC = _static_slab()


# ------------------------------- Pallas kernel -------------------------------
def nystrom_attention_kernel(x_ref, w_ref, c_ref, o_ref):
    f32 = jnp.float32

    def mm(a, b):          # (M,K) @ (K,N)
        return lax.dot_general(a, b, (((1,), (0,)), ((), ())),
                               preferred_element_type=f32)

    def mm_t(a, b):        # (M,K) @ (N,K)^T  (contract last dims)
        return lax.dot_general(a, b, (((1,), (1,)), ((), ())),
                               preferred_element_type=f32)

    # ---- constants out of the packed slab (all slices sublane/lane aligned) -
    lmask2 = c_ref[R_LMASK:R_LMASK + LBH, :]            # (40, 128)
    lmask = lmask2[:, 0:WIDE]                           # (40, 64)
    bd5 = c_ref[R_BD5:R_BD5 + LBH, 0:LBH]               # (40, 40)
    eye = c_ref[R_EYE:R_EYE + LBH, 0:LBH]               # (40, 40)
    negm = c_ref[R_NEG:R_NEG + LBH, 0:LBH]              # (40, 40)
    p8 = c_ref[R_P8:R_P8 + LBH, 0:N]                    # (40, 17)
    taps = c_ref[R_TAPS:R_TAPS + 8, 0:WIDE]             # (8, 64), rows 0..2 valid

    xw = x_ref[...]                                     # (N, WIDE)

    # ---- fused QKV projection (1/scale already folded into q/k weights) -----
    qkv = mm(xw, w_ref[...])              # (N, 3*WIDE);  lane = 32*b + 8*h + d
    qw = qkv[:, 0:WIDE]
    kw = qkv[:, WIDE:2 * WIDE]
    vw = qkv[:, 2 * WIDE:3 * WIDE]

    # ---- landmark pooling for Q and K: ONE matmul on the 128-lane slab ------
    qkl = mm(p8, qkv[:, 0:2 * WIDE]) * lmask2           # (LBH, 128)
    ql_bd = qkl[:, 0:WIDE]                              # (LBH, WIDE)
    kl_bd = qkl[:, WIDE:2 * WIDE]                       # (LBH, WIDE)

    # ---- all 8 heads' score matrices, one matmul each ------------------------
    s1 = mm_t(qw, kl_bd)                  # (N, LBH):   col block i = Q_i  Kl_i^T
    s2 = mm_t(ql_bd, kl_bd)               # (LBH, LBH): block-diag  Ql_i Kl_i^T
    s3 = mm_t(ql_bd, kw)                  # (LBH, N):   row block i = Ql_i K_i^T

    # kernel_1: softmax per 5-wide head block (per-row constant shift cancels;
    # block sums broadcast back via the bd5 ones pattern).  Denominator clamp
    # keeps a fully-underflowed block at 0 instead of inf/NaN.
    e1 = jnp.exp(s1 - jnp.max(s1, axis=-1, keepdims=True))
    d1 = jnp.maximum(mm(e1, bd5), 1e-30)
    k1 = e1 * pl.reciprocal(d1, approx=True)

    # kernel_2: push off-block entries to -1e30 so a full-row softmax equals
    # the per-head softmax and off-block entries are exactly 0.  Exact divide:
    # this feeds the Newton-Schulz iteration.
    s2m = s2 + negm
    e2 = jnp.exp(s2m - jnp.max(s2m, axis=-1, keepdims=True))
    k2 = e2 / jnp.sum(e2, axis=-1, keepdims=True)

    # kernel_3: plain row softmax (each row belongs to exactly one head)
    e3 = jnp.exp(s3 - jnp.max(s3, axis=-1, keepdims=True))
    d3 = jnp.maximum(jnp.sum(e3, axis=-1, keepdims=True), 1e-30)
    k3 = e3 * pl.reciprocal(d3, approx=True)

    # ---- everything the NS loop does NOT need, computed up front (off the
    #      serial critical path, small cross-loop live set) -------------------
    # depthwise conv along the sequence axis: zero-padded sublane shifts +
    # per-lane taps (no matmuls; fully hidden under the NS chain)
    pad = KERNEL_SIZE // 2
    conv = taps[pad:pad + 1, :] * vw
    for t in range(KERNEL_SIZE):
        off = t - pad
        if off == 0:
            continue
        if off < 0:   # output n reads V[n + off], zero padding at the top
            shifted = jnp.concatenate(
                [jnp.zeros((-off, WIDE), f32), vw[:N + off, :]], axis=0)
        else:         # output n reads V[n + off], zero padding at the bottom
            shifted = jnp.concatenate(
                [vw[off:, :], jnp.zeros((off, WIDE), f32)], axis=0)
        conv = conv + taps[t:t + 1, :] * shifted

    kv3 = mm(k3, vw) * lmask              # (LBH, WIDE): block i = k3_i @ V_i
    h1 = mm_t(k1, k2)                     # (N, LBH)   = kernel_1 @ kernel_2^T
    g = mm_t(k2, k2)                      # (LBH, LBH) = kernel_2 @ kernel_2^T

    # global init scale: torch.max over the whole (B,H,L1,L1) tensor; with the
    # block-diagonal packing the (40,40) row/col sums equal the per-head sums.
    a2 = jnp.abs(k2)
    g_col = jnp.max(jnp.sum(a2, axis=-2, keepdims=True), axis=-1, keepdims=True)
    g_row = jnp.max(jnp.sum(a2, axis=-1, keepdims=True), axis=-2, keepdims=True)
    c = 1.0 / (g_col * g_row)             # (1, 1)

    # ---- Newton-Schulz pseudo-inverse on the (40,40) block-diagonal kernel_2.
    # Transpose-free (V_m = k2^T @ A_m), iteration 0 peeled (A_0 = c*I), and
    # identity-free polynomial: 22 serially-dependent matmuls total.
    kv = c * g                                      # g @ (c*I): no matmul
    t1 = 7.0 * kv - mm(kv, kv)
    t2 = 15.0 * kv - mm(kv, t1)
    a = (3.25 * c) * eye - (0.25 * c) * t2          # A_1; eye dies here
    for _ in range(N_ITER - 1):
        kv = mm(g, a)
        t1 = 7.0 * kv - mm(kv, kv)
        t2 = 15.0 * kv - mm(kv, t1)
        a = 3.25 * a - 0.25 * mm(a, t2)

    # ---- combine; result in lanes 0:64, upper half zero -> unmasked store ---
    x_attn = mm(mm(h1, a), kv3)           # (N, WIDE)
    res = (x_attn + conv).astype(o_ref.dtype)
    o_ref[...] = jnp.concatenate([res, jnp.zeros_like(res)], axis=-1)


# --------------------------------- wrapper -----------------------------------
@jax.jit
def nystrom_attention(x, w_qkv, conv_w):
    """x: (B, N, DIM); w_qkv: (3*DIM, DIM) torch Linear layout; conv_w: (H,1,ks,1)."""
    f32 = jnp.float32
    # --- parameter / layout plumbing only; all FLOPs happen in the kernel ----
    wq = jnp.transpose(w_qkv[0 * DIM:1 * DIM]).astype(f32) * (1.0 / SCALE)
    wk = jnp.transpose(w_qkv[1 * DIM:2 * DIM]).astype(f32) * (1.0 / SCALE)
    wv = jnp.transpose(w_qkv[2 * DIM:3 * DIM]).astype(f32)
    z = jnp.zeros((DIM, DIM), f32)

    def per_batch_block_diag(w):          # (DIM, DIM) -> (WIDE, WIDE)
        rows = []
        for b in range(B):
            rows.append(jnp.concatenate(
                [w if bb == b else z for bb in range(B)], axis=1))
        return jnp.concatenate(rows, axis=0)

    w_big = jnp.concatenate([per_batch_block_diag(wq),
                             per_batch_block_diag(wk),
                             per_batch_block_diag(wv)], axis=1)    # (WIDE, 3*WIDE)

    cw = conv_w[:, 0, :, 0].astype(f32)                            # (H, ks)
    # per-lane conv taps: taps[t, 32*b + 8*h + d] = cw[h, t]
    taps = jnp.tile(jnp.repeat(jnp.transpose(cw), HEAD_DIM, axis=1), (1, B))
    taps_pad = jnp.pad(taps, ((0, 8 - KERNEL_SIZE), (0, 128 - WIDE)))

    # single constant slab: static constants + runtime conv taps, one DMA
    slab = jnp.concatenate([jnp.asarray(_SLAB_STATIC), taps_pad], axis=0)

    # x_wide[n, 32*b + c] = x[b, n, c]
    x_wide = jnp.transpose(x, (1, 0, 2)).reshape(N, WIDE).astype(f32)

    out_wide = pl.pallas_call(
        nystrom_attention_kernel,
        out_shape=jax.ShapeDtypeStruct((N, 128), jnp.float32),
        in_specs=[pl.BlockSpec(memory_space=pltpu.MemorySpace.VMEM)] * 3,
        out_specs=pl.BlockSpec(memory_space=pltpu.MemorySpace.VMEM),
    )(x_wide, w_big, slab)

    # (N, 128) -> take lanes 0:64 -> (B, N, DIM); channel block h*HEAD_DIM.. = head h
    return jnp.transpose(out_wide[:, :WIDE].reshape(N, B, DIM), (1, 0, 2))


# ------------------------- pure-JAX reference (check) -------------------------
def reference(x, w_qkv, conv_w):
    Bx, Nx, Cx = x.shape
    hi = lax.Precision.HIGHEST
    qkv = jnp.einsum("bnc,oc->bno", x, w_qkv, precision=hi)
    qkv = qkv.reshape(Bx, Nx, 3, NUM_HEADS, HEAD_DIM).transpose(2, 0, 3, 1, 4)
    Q, K, V = qkv[0] / SCALE, qkv[1] / SCALE, qkv[2]

    def land(t):
        body = t[..., 1:, :].reshape(Bx, NUM_HEADS, NUM_LANDMARKS, SEG,
                                     HEAD_DIM).mean(axis=-2)
        return jnp.concatenate([t[..., 0:1, :], body], axis=2)

    Ql, Kl = land(Q), land(K)
    sm = lambda s: jax.nn.softmax(s, axis=-1)
    k1 = sm(jnp.einsum("bhnd,bhmd->bhnm", Q, Kl, precision=hi))
    k2 = sm(jnp.einsum("bhnd,bhmd->bhnm", Ql, Kl, precision=hi))
    k3 = sm(jnp.einsum("bhnd,bhmd->bhnm", Ql, K, precision=hi))

    I = jnp.eye(L1, dtype=jnp.float32)
    bmm = lambda a, b: jnp.einsum("...ij,...jk->...ik", a, b, precision=hi)
    Vm = (1.0 / (jnp.max(jnp.sum(jnp.abs(k2), axis=-2))
                 * jnp.max(jnp.sum(jnp.abs(k2), axis=-1)))) * jnp.swapaxes(k2, -1, -2)
    for _ in range(N_ITER):
        KV = bmm(k2, Vm)
        Vm = bmm(0.25 * Vm, 13.0 * I - bmm(KV, 15.0 * I - bmm(KV, 7.0 * I - KV)))
    X = bmm(bmm(k1, Vm), bmm(k3, V))

    pad = KERNEL_SIZE // 2
    Vp = jnp.pad(V, ((0, 0), (0, 0), (pad, pad), (0, 0)))
    conv = sum(conv_w[:, 0, t, 0][None, :, None, None] * Vp[:, :, t:t + Nx, :]
               for t in range(KERNEL_SIZE))
    X = X + conv
    return X.transpose(0, 2, 1, 3).reshape(Bx, Nx, Cx)


if __name__ == "__main__":
    key = jax.random.PRNGKey(0)
    kx, kw, kc = jax.random.split(key, 3)
    x = jax.random.normal(kx, (B, N, DIM), jnp.float32)
    w_qkv = jax.random.normal(kw, (3 * DIM, DIM), jnp.float32) * 0.05
    conv_w = jax.random.normal(kc, (NUM_HEADS, 1, KERNEL_SIZE, 1), jnp.float32) * 0.1

    out = jax.block_until_ready(nystrom_attention(x, w_qkv, conv_w))

    ref = reference(x, w_qkv, conv_w)
    err = float(jnp.max(jnp.abs(out - ref)))
    assert out.shape == (B, N, DIM), out.shape
    assert err < 1e-2, f"max abs err {err}"
    print("KERNEL_OK")
</pallas_src>

<mosaic_0001>
module attributes {stable_mosaic.version = 11 : i64} {
  func.func @nystrom_attention_kernel(%arg0: memref<17x64xf32, #tpu.memory_space<vmem>>, %arg1: memref<64x192xf32, #tpu.memory_space<vmem>>, %arg2: memref<208x128xf32, #tpu.memory_space<vmem>>, %arg3: memref<17x128xf32, #tpu.memory_space<vmem>>) attributes {dimension_semantics = [], scalar_prefetch = 0 : i64, scratch_operands = 0 : i64, tpu.core_type = #tpu.core_type<tc>} {
    %c0 = arith.constant 0 : index
    %c0_0 = arith.constant 0 : index
    %0 = vector.load %arg2[%c0, %c0_0] : memref<208x128xf32, #tpu.memory_space<vmem>>, vector<40x128xf32>
    %1 = vector.extract_strided_slice %0 {offsets = [0, 0], sizes = [40, 64], strides = [1, 1]} : vector<40x128xf32> to vector<40x64xf32>
    %c40 = arith.constant 40 : index
    %c0_1 = arith.constant 0 : index
    %2 = vector.load %arg2[%c40, %c0_1] : memref<208x128xf32, #tpu.memory_space<vmem>>, vector<40x40xf32>
    %c80 = arith.constant 80 : index
    %c0_2 = arith.constant 0 : index
    %3 = vector.load %arg2[%c80, %c0_2] : memref<208x128xf32, #tpu.memory_space<vmem>>, vector<40x40xf32>
    %c120 = arith.constant 120 : index
    %c0_3 = arith.constant 0 : index
    %4 = vector.load %arg2[%c120, %c0_3] : memref<208x128xf32, #tpu.memory_space<vmem>>, vector<40x40xf32>
    %c160 = arith.constant 160 : index
    %c0_4 = arith.constant 0 : index
    %5 = vector.load %arg2[%c160, %c0_4] : memref<208x128xf32, #tpu.memory_space<vmem>>, vector<40x17xf32>
    %c200 = arith.constant 200 : index
    %c0_5 = arith.constant 0 : index
    %6 = vector.load %arg2[%c200, %c0_5] : memref<208x128xf32, #tpu.memory_space<vmem>>, vector<8x64xf32>
    %c0_6 = arith.constant 0 : index
    %c0_7 = arith.constant 0 : index
    %7 = vector.load %arg0[%c0_6, %c0_7] : memref<17x64xf32, #tpu.memory_space<vmem>>, vector<17x64xf32>
    %c0_8 = arith.constant 0 : index
    %c0_9 = arith.constant 0 : index
    %8 = vector.load %arg1[%c0_8, %c0_9] : memref<64x192xf32, #tpu.memory_space<vmem>>, vector<64x192xf32>
    %cst = arith.constant dense<0.000000e+00> : vector<17x192xf32>
    %9 = tpu.matmul %7, %8, %cst {dimension_numbers = #tpu.dot_dimension_numbers<[1], [0], [0], [1], [0, 0, 1, 1], [], []>} : vector<17x64xf32>, vector<64x192xf32>, vector<17x192xf32> -> vector<17x192xf32>
    %10 = vector.extract_strided_slice %9 {offsets = [0, 0], sizes = [17, 64], strides = [1, 1]} : vector<17x192xf32> to vector<17x64xf32>
    %11 = vector.extract_strided_slice %9 {offsets = [0, 64], sizes = [17, 64], strides = [1, 1]} : vector<17x192xf32> to vector<17x64xf32>
    %12 = vector.extract_strided_slice %9 {offsets = [0, 128], sizes = [17, 64], strides = [1, 1]} : vector<17x192xf32> to vector<17x64xf32>
    %13 = vector.extract_strided_slice %9 {offsets = [0, 0], sizes = [17, 128], strides = [1, 1]} : vector<17x192xf32> to vector<17x128xf32>
    %cst_10 = arith.constant dense<0.000000e+00> : vector<40x128xf32>
    %14 = tpu.matmul %5, %13, %cst_10 {dimension_numbers = #tpu.dot_dimension_numbers<[1], [0], [0], [1], [0, 0, 1, 1], [], []>} : vector<40x17xf32>, vector<17x128xf32>, vector<40x128xf32> -> vector<40x128xf32>
    %15 = arith.mulf %14, %0 : vector<40x128xf32>
    %16 = vector.extract_strided_slice %15 {offsets = [0, 0], sizes = [40, 64], strides = [1, 1]} : vector<40x128xf32> to vector<40x64xf32>
    %17 = vector.extract_strided_slice %15 {offsets = [0, 64], sizes = [40, 64], strides = [1, 1]} : vector<40x128xf32> to vector<40x64xf32>
    %cst_11 = arith.constant dense<0.000000e+00> : vector<17x40xf32>
    %18 = tpu.matmul %10, %17, %cst_11 {dimension_numbers = #tpu.dot_dimension_numbers<[1], [1], [0], [0], [0, 0, 1, 0], [], []>} : vector<17x64xf32>, vector<40x64xf32>, vector<17x40xf32> -> vector<17x40xf32>
    %cst_12 = arith.constant dense<0.000000e+00> : vector<40x40xf32>
    %19 = tpu.matmul %16, %17, %cst_12 {dimension_numbers = #tpu.dot_dimension_numbers<[1], [1], [0], [0], [0, 0, 1, 0], [], []>} : vector<40x64xf32>, vector<40x64xf32>, vector<40x40xf32> -> vector<40x40xf32>
    %cst_13 = arith.constant dense<0.000000e+00> : vector<40x17xf32>
    %20 = tpu.matmul %16, %11, %cst_13 {dimension_numbers = #tpu.dot_dimension_numbers<[1], [1], [0], [0], [0, 0, 1, 0], [], []>} : vector<40x64xf32>, vector<17x64xf32>, vector<40x17xf32> -> vector<40x17xf32>
    %cst_14 = arith.constant dense<0xFF800000> : vector<17xf32>
    %21 = vector.multi_reduction <maximumf>, %18, %cst_14 [1] : vector<17x40xf32> to vector<17xf32>
    %22 = vector.shape_cast %21 : vector<17xf32> to vector<17x1xf32>
    %23 = vector.broadcast %22 : vector<17x1xf32> to vector<17x40xf32>
    %24 = arith.subf %18, %23 : vector<17x40xf32>
    %25 = math.exp %24 : vector<17x40xf32>
    %cst_15 = arith.constant dense<0.000000e+00> : vector<17x40xf32>
    %26 = tpu.matmul %25, %2, %cst_15 {dimension_numbers = #tpu.dot_dimension_numbers<[1], [0], [0], [1], [0, 0, 1, 1], [], []>} : vector<17x40xf32>, vector<40x40xf32>, vector<17x40xf32> -> vector<17x40xf32>
    %cst_16 = arith.constant 1.000000e-30 : f32
    %27 = vector.broadcast %cst_16 : f32 to vector<17x40xf32>
    %28 = arith.maximumf %26, %27 : vector<17x40xf32>
    %29 = tpu.reciprocal %28 {approx = true} : vector<17x40xf32> -> vector<17x40xf32>
    %30 = arith.mulf %25, %29 : vector<17x40xf32>
    %31 = arith.addf %19, %4 : vector<40x40xf32>
    %cst_17 = arith.constant dense<0xFF800000> : vector<40xf32>
    %32 = vector.multi_reduction <maximumf>, %31, %cst_17 [1] : vector<40x40xf32> to vector<40xf32>
    %33 = vector.shape_cast %32 : vector<40xf32> to vector<40x1xf32>
    %34 = vector.broadcast %33 : vector<40x1xf32> to vector<40x40xf32>
    %35 = arith.subf %31, %34 : vector<40x40xf32>
    %36 = math.exp %35 : vector<40x40xf32>
    %cst_18 = arith.constant dense<0.000000e+00> : vector<40xf32>
    %37 = vector.multi_reduction <add>, %36, %cst_18 [1] : vector<40x40xf32> to vector<40xf32>
    %38 = vector.shape_cast %37 : vector<40xf32> to vector<40x1xf32>
    %39 = vector.broadcast %38 : vector<40x1xf32> to vector<40x40xf32>
    %40 = arith.divf %36, %39 : vector<40x40xf32>
    %cst_19 = arith.constant dense<0xFF800000> : vector<40xf32>
    %41 = vector.multi_reduction <maximumf>, %20, %cst_19 [1] : vector<40x17xf32> to vector<40xf32>
    %42 = vector.shape_cast %41 : vector<40xf32> to vector<40x1xf32>
    %43 = vector.broadcast %42 : vector<40x1xf32> to vector<40x17xf32>
    %44 = arith.subf %20, %43 : vector<40x17xf32>
    %45 = math.exp %44 : vector<40x17xf32>
    %cst_20 = arith.constant dense<0.000000e+00> : vector<40xf32>
    %46 = vector.multi_reduction <add>, %45, %cst_20 [1] : vector<40x17xf32> to vector<40xf32>
    %47 = vector.shape_cast %46 : vector<40xf32> to vector<40x1xf32>
    %cst_21 = arith.constant 1.000000e-30 : f32
    %48 = vector.broadcast %cst_21 : f32 to vector<40x1xf32>
    %49 = arith.maximumf %47, %48 : vector<40x1xf32>
    %50 = tpu.reciprocal %49 {approx = true} : vector<40x1xf32> -> vector<40x1xf32>
    %51 = vector.broadcast %50 : vector<40x1xf32> to vector<40x17xf32>
    %52 = arith.mulf %45, %51 : vector<40x17xf32>
    %53 = vector.extract_strided_slice %6 {offsets = [1, 0], sizes = [1, 64], strides = [1, 1]} : vector<8x64xf32> to vector<1x64xf32>
    %54 = vector.broadcast %53 : vector<1x64xf32> to vector<17x64xf32>
    %55 = arith.mulf %54, %12 : vector<17x64xf32>
    %cst_22 = arith.constant 0.000000e+00 : f32
    %56 = vector.broadcast %cst_22 : f32 to vector<1x64xf32>
    %57 = vector.extract_strided_slice %12 {offsets = [0, 0], sizes = [16, 64], strides = [1, 1]} : vector<17x64xf32> to vector<16x64xf32>
    %58 = tpu.concatenate %56, %57 in 0 : vector<1x64xf32>, vector<16x64xf32> -> vector<17x64xf32>
    %59 = vector.extract_strided_slice %6 {offsets = [0, 0], sizes = [1, 64], strides = [1, 1]} : vector<8x64xf32> to vector<1x64xf32>
    %60 = vector.broadcast %59 : vector<1x64xf32> to vector<17x64xf32>
    %61 = arith.mulf %60, %58 : vector<17x64xf32>
    %62 = arith.addf %55, %61 : vector<17x64xf32>
    %63 = vector.extract_strided_slice %12 {offsets = [1, 0], sizes = [16, 64], strides = [1, 1]} : vector<17x64xf32> to vector<16x64xf32>
    %cst_23 = arith.constant 0.000000e+00 : f32
    %64 = vector.broadcast %cst_23 : f32 to vector<1x64xf32>
    %65 = tpu.concatenate %63, %64 in 0 : vector<16x64xf32>, vector<1x64xf32> -> vector<17x64xf32>
    %66 = vector.extract_strided_slice %6 {offsets = [2, 0], sizes = [1, 64], strides = [1, 1]} : vector<8x64xf32> to vector<1x64xf32>
    %67 = vector.broadcast %66 : vector<1x64xf32> to vector<17x64xf32>
    %68 = arith.mulf %67, %65 : vector<17x64xf32>
    %69 = arith.addf %62, %68 : vector<17x64xf32>
    %cst_24 = arith.constant dense<0.000000e+00> : vector<40x64xf32>
    %70 = tpu.matmul %52, %12, %cst_24 {dimension_numbers = #tpu.dot_dimension_numbers<[1], [0], [0], [1], [0, 0, 1, 1], [], []>} : vector<40x17xf32>, vector<17x64xf32>, vector<40x64xf32> -> vector<40x64xf32>
    %71 = arith.mulf %70, %1 : vector<40x64xf32>
    %cst_25 = arith.constant dense<0.000000e+00> : vector<17x40xf32>
    %72 = tpu.matmul %30, %40, %cst_25 {dimension_numbers = #tpu.dot_dimension_numbers<[1], [1], [0], [0], [0, 0, 1, 0], [], []>} : vector<17x40xf32>, vector<40x40xf32>, vector<17x40xf32> -> vector<17x40xf32>
    %cst_26 = arith.constant dense<0.000000e+00> : vector<40x40xf32>
    %73 = tpu.matmul %40, %40, %cst_26 {dimension_numbers = #tpu.dot_dimension_numbers<[1], [1], [0], [0], [0, 0, 1, 0], [], []>} : vector<40x40xf32>, vector<40x40xf32>, vector<40x40xf32> -> vector<40x40xf32>
    %74 = math.absf %40 : vector<40x40xf32>
    %cst_27 = arith.constant dense<0.000000e+00> : vector<40xf32>
    %75 = vector.multi_reduction <add>, %74, %cst_27 [0] : vector<40x40xf32> to vector<40xf32>
    %76 = vector.shape_cast %75 : vector<40xf32> to vector<1x40xf32>
    %cst_28 = arith.constant dense<0xFF800000> : vector<1xf32>
    %77 = vector.multi_reduction <maximumf>, %76, %cst_28 [1] : vector<1x40xf32> to vector<1xf32>
    %78 = vector.shape_cast %77 : vector<1xf32> to vector<1x1xf32>
    %cst_29 = arith.constant dense<0.000000e+00> : vector<40xf32>
    %79 = vector.multi_reduction <add>, %74, %cst_29 [1] : vector<40x40xf32> to vector<40xf32>
    %80 = vector.shape_cast %79 : vector<40xf32> to vector<40x1xf32>
    %cst_30 = arith.constant dense<0xFF800000> : vector<1xf32>
    %81 = vector.multi_reduction <maximumf>, %80, %cst_30 [0] : vector<40x1xf32> to vector<1xf32>
    %82 = vector.shape_cast %81 : vector<1xf32> to vector<1x1xf32>
    %83 = arith.mulf %78, %82 : vector<1x1xf32>
    %cst_31 = arith.constant 1.000000e+00 : f32
    %84 = vector.broadcast %cst_31 : f32 to vector<1x1xf32>
    %85 = arith.divf %84, %83 : vector<1x1xf32>
    %86 = vector.broadcast %85 : vector<1x1xf32> to vector<40x40xf32>
    %87 = arith.mulf %86, %73 : vector<40x40xf32>
    %cst_32 = arith.constant 7.000000e+00 : f32
    %88 = vector.broadcast %cst_32 : f32 to vector<40x40xf32>
    %89 = arith.mulf %88, %87 : vector<40x40xf32>
    %cst_33 = arith.constant dense<0.000000e+00> : vector<40x40xf32>
    %90 = tpu.matmul %87, %87, %cst_33 {dimension_numbers = #tpu.dot_dimension_numbers<[1], [0], [0], [1], [0, 0, 1, 1], [], []>} : vector<40x40xf32>, vector<40x40xf32>, vector<40x40xf32> -> vector<40x40xf32>
    %91 = arith.subf %89, %90 : vector<40x40xf32>
    %cst_34 = arith.constant 1.500000e+01 : f32
    %92 = vector.broadcast %cst_34 : f32 to vector<40x40xf32>
    %93 = arith.mulf %92, %87 : vector<40x40xf32>
    %cst_35 = arith.constant dense<0.000000e+00> : vector<40x40xf32>
    %94 = tpu.matmul %87, %91, %cst_35 {dimension_numbers = #tpu.dot_dimension_numbers<[1], [0], [0], [1], [0, 0, 1, 1], [], []>} : vector<40x40xf32>, vector<40x40xf32>, vector<40x40xf32> -> vector<40x40xf32>
    %95 = arith.subf %93, %94 : vector<40x40xf32>
    %cst_36 = arith.constant 3.250000e+00 : f32
    %96 = vector.broadcast %cst_36 : f32 to vector<1x1xf32>
    %97 = arith.mulf %96, %85 : vector<1x1xf32>
    %98 = vector.broadcast %97 : vector<1x1xf32> to vector<40x40xf32>
    %99 = arith.mulf %98, %3 : vector<40x40xf32>
    %cst_37 = arith.constant 2.500000e-01 : f32
    %100 = vector.broadcast %cst_37 : f32 to vector<1x1xf32>
    %101 = arith.mulf %100, %85 : vector<1x1xf32>
    %102 = vector.broadcast %101 : vector<1x1xf32> to vector<40x40xf32>
    %103 = arith.mulf %102, %95 : vector<40x40xf32>
    %104 = arith.subf %99, %103 : vector<40x40xf32>
    %cst_38 = arith.constant dense<0.000000e+00> : vector<40x40xf32>
    %105 = tpu.matmul %73, %104, %cst_38 {dimension_numbers = #tpu.dot_dimension_numbers<[1], [0], [0], [1], [0, 0, 1, 1], [], []>} : vector<40x40xf32>, vector<40x40xf32>, vector<40x40xf32> -> vector<40x40xf32>
    %cst_39 = arith.constant 7.000000e+00 : f32
    %106 = vector.broadcast %cst_39 : f32 to vector<40x40xf32>
    %107 = arith.mulf %106, %105 : vector<40x40xf32>
    %cst_40 = arith.constant dense<0.000000e+00> : vector<40x40xf32>
    %108 = tpu.matmul %105, %105, %cst_40 {dimension_numbers = #tpu.dot_dimension_numbers<[1], [0], [0], [1], [0, 0, 1, 1], [], []>} : vector<40x40xf32>, vector<40x40xf32>, vector<40x40xf32> -> vector<40x40xf32>
    %109 = arith.subf %107, %108 : vector<40x40xf32>
    %cst_41 = arith.constant 1.500000e+01 : f32
    %110 = vector.broadcast %cst_41 : f32 to vector<40x40xf32>
    %111 = arith.mulf %110, %105 : vector<40x40xf32>
    %cst_42 = arith.constant dense<0.000000e+00> : vector<40x40xf32>
    %112 = tpu.matmul %105, %109, %cst_42 {dimension_numbers = #tpu.dot_dimension_numbers<[1], [0], [0], [1], [0, 0, 1, 1], [], []>} : vector<40x40xf32>, vector<40x40xf32>, vector<40x40xf32> -> vector<40x40xf32>
    %113 = arith.subf %111, %112 : vector<40x40xf32>
    %cst_43 = arith.constant 3.250000e+00 : f32
    %114 = vector.broadcast %cst_43 : f32 to vector<40x40xf32>
    %115 = arith.mulf %114, %104 : vector<40x40xf32>
    %cst_44 = arith.constant dense<0.000000e+00> : vector<40x40xf32>
    %116 = tpu.matmul %104, %113, %cst_44 {dimension_numbers = #tpu.dot_dimension_numbers<[1], [0], [0], [1], [0, 0, 1, 1], [], []>} : vector<40x40xf32>, vector<40x40xf32>, vector<40x40xf32> -> vector<40x40xf32>
    %cst_45 = arith.constant 2.500000e-01 : f32
    %117 = vector.broadcast %cst_45 : f32 to vector<40x40xf32>
    %118 = arith.mulf %117, %116 : vector<40x40xf32>
    %119 = arith.subf %115, %118 : vector<40x40xf32>
    %cst_46 = arith.constant dense<0.000000e+00> : vector<40x40xf32>
    %120 = tpu.matmul %73, %119, %cst_46 {dimension_numbers = #tpu.dot_dimension_numbers<[1], [0], [0], [1], [0, 0, 1, 1], [], []>} : vector<40x40xf32>, vector<40x40xf32>, vector<40x40xf32> -> vector<40x40xf32>
    %cst_47 = arith.constant 7.000000e+00 : f32
    %121 = vector.broadcast %cst_47 : f32 to vector<40x40xf32>
    %122 = arith.mulf %121, %120 : vector<40x40xf32>
    %cst_48 = arith.constant dense<0.000000e+00> : vector<40x40xf32>
    %123 = tpu.matmul %120, %120, %cst_48 {dimension_numbers = #tpu.dot_dimension_numbers<[1], [0], [0], [1], [0, 0, 1, 1], [], []>} : vector<40x40xf32>, vector<40x40xf32>, vector<40x40xf32> -> vector<40x40xf32>
    %124 = arith.subf %122, %123 : vector<40x40xf32>
    %cst_49 = arith.constant 1.500000e+01 : f32
    %125 = vector.broadcast %cst_49 : f32 to vector<40x40xf32>
    %126 = arith.mulf %125, %120 : vector<40x40xf32>
    %cst_50 = arith.constant dense<0.000000e+00> : vector<40x40xf32>
    %127 = tpu.matmul %120, %124, %cst_50 {dimension_numbers = #tpu.dot_dimension_numbers<[1], [0], [0], [1], [0, 0, 1, 1], [], []>} : vector<40x40xf32>, vector<40x40xf32>, vector<40x40xf32> -> vector<40x40xf32>
    %128 = arith.subf %126, %127 : vector<40x40xf32>
    %cst_51 = arith.constant 3.250000e+00 : f32
    %129 = vector.broadcast %cst_51 : f32 to vector<40x40xf32>
    %130 = arith.mulf %129, %119 : vector<40x40xf32>
    %cst_52 = arith.constant dense<0.000000e+00> : vector<40x40xf32>
    %131 = tpu.matmul %119, %128, %cst_52 {dimension_numbers = #tpu.dot_dimension_numbers<[1], [0], [0], [1], [0, 0, 1, 1], [], []>} : vector<40x40xf32>, vector<40x40xf32>, vector<40x40xf32> -> vector<40x40xf32>
    %cst_53 = arith.constant 2.500000e-01 : f32
    %132 = vector.broadcast %cst_53 : f32 to vector<40x40xf32>
    %133 = arith.mulf %132, %131 : vector<40x40xf32>
    %134 = arith.subf %130, %133 : vector<40x40xf32>
    %cst_54 = arith.constant dense<0.000000e+00> : vector<40x40xf32>
    %135 = tpu.matmul %73, %134, %cst_54 {dimension_numbers = #tpu.dot_dimension_numbers<[1], [0], [0], [1], [0, 0, 1, 1], [], []>} : vector<40x40xf32>, vector<40x40xf32>, vector<40x40xf32> -> vector<40x40xf32>
    %cst_55 = arith.constant 7.000000e+00 : f32
    %136 = vector.broadcast %cst_55 : f32 to vector<40x40xf32>
    %137 = arith.mulf %136, %135 : vector<40x40xf32>
    %cst_56 = arith.constant dense<0.000000e+00> : vector<40x40xf32>
    %138 = tpu.matmul %135, %135, %cst_56 {dimension_numbers = #tpu.dot_dimension_numbers<[1], [0], [0], [1], [0, 0, 1, 1], [], []>} : vector<40x40xf32>, vector<40x40xf32>, vector<40x40xf32> -> vector<40x40xf32>
    %139 = arith.subf %137, %138 : vector<40x40xf32>
    %cst_57 = arith.constant 1.500000e+01 : f32
    %140 = vector.broadcast %cst_57 : f32 to vector<40x40xf32>
    %141 = arith.mulf %140, %135 : vector<40x40xf32>
    %cst_58 = arith.constant dense<0.000000e+00> : vector<40x40xf32>
    %142 = tpu.matmul %135, %139, %cst_58 {dimension_numbers = #tpu.dot_dimension_numbers<[1], [0], [0], [1], [0, 0, 1, 1], [], []>} : vector<40x40xf32>, vector<40x40xf32>, vector<40x40xf32> -> vector<40x40xf32>
    %143 = arith.subf %141, %142 : vector<40x40xf32>
    %cst_59 = arith.constant 3.250000e+00 : f32
    %144 = vector.broadcast %cst_59 : f32 to vector<40x40xf32>
    %145 = arith.mulf %144, %134 : vector<40x40xf32>
    %cst_60 = arith.constant dense<0.000000e+00> : vector<40x40xf32>
    %146 = tpu.matmul %134, %143, %cst_60 {dimension_numbers = #tpu.dot_dimension_numbers<[1], [0], [0], [1], [0, 0, 1, 1], [], []>} : vector<40x40xf32>, vector<40x40xf32>, vector<40x40xf32> -> vector<40x40xf32>
    %cst_61 = arith.constant 2.500000e-01 : f32
    %147 = vector.broadcast %cst_61 : f32 to vector<40x40xf32>
    %148 = arith.mulf %147, %146 : vector<40x40xf32>
    %149 = arith.subf %145, %148 : vector<40x40xf32>
    %cst_62 = arith.constant dense<0.000000e+00> : vector<40x40xf32>
    %150 = tpu.matmul %73, %149, %cst_62 {dimension_numbers = #tpu.dot_dimension_numbers<[1], [0], [0], [1], [0, 0, 1, 1], [], []>} : vector<40x40xf32>, vector<40x40xf32>, vector<40x40xf32> -> vector<40x40xf32>
    %cst_63 = arith.constant 7.000000e+00 : f32
    %151 = vector.broadcast %cst_63 : f32 to vector<40x40xf32>
    %152 = arith.mulf %151, %150 : vector<40x40xf32>
    %cst_64 = arith.constant dense<0.000000e+00> : vector<40x40xf32>
    %153 = tpu.matmul %150, %150, %cst_64 {dimension_numbers = #tpu.dot_dimension_numbers<[1], [0], [0], [1], [0, 0, 1, 1], [], []>} : vector<40x40xf32>, vector<40x40xf32>, vector<40x40xf32> -> vector<40x40xf32>
    %154 = arith.subf %152, %153 : vector<40x40xf32>
    %cst_65 = arith.constant 1.500000e+01 : f32
    %155 = vector.broadcast %cst_65 : f32 to vector<40x40xf32>
    %156 = arith.mulf %155, %150 : vector<40x40xf32>
    %cst_66 = arith.constant dense<0.000000e+00> : vector<40x40xf32>
    %157 = tpu.matmul %150, %154, %cst_66 {dimension_numbers = #tpu.dot_dimension_numbers<[1], [0], [0], [1], [0, 0, 1, 1], [], []>} : vector<40x40xf32>, vector<40x40xf32>, vector<40x40xf32> -> vector<40x40xf32>
    %158 = arith.subf %156, %157 : vector<40x40xf32>
    %cst_67 = arith.constant 3.250000e+00 : f32
    %159 = vector.broadcast %cst_67 : f32 to vector<40x40xf32>
    %160 = arith.mulf %159, %149 : vector<40x40xf32>
    %cst_68 = arith.constant dense<0.000000e+00> : vector<40x40xf32>
    %161 = tpu.matmul %149, %158, %cst_68 {dimension_numbers = #tpu.dot_dimension_numbers<[1], [0], [0], [1], [0, 0, 1, 1], [], []>} : vector<40x40xf32>, vector<40x40xf32>, vector<40x40xf32> -> vector<40x40xf32>
    %cst_69 = arith.constant 2.500000e-01 : f32
    %162 = vector.broadcast %cst_69 : f32 to vector<40x40xf32>
    %163 = arith.mulf %162, %161 : vector<40x40xf32>
    %164 = arith.subf %160, %163 : vector<40x40xf32>
    %cst_70 = arith.constant dense<0.000000e+00> : vector<40x40xf32>
    %165 = tpu.matmul %73, %164, %cst_70 {dimension_numbers = #tpu.dot_dimension_numbers<[1], [0], [0], [1], [0, 0, 1, 1], [], []>} : vector<40x40xf32>, vector<40x40xf32>, vector<40x40xf32> -> vector<40x40xf32>
    %cst_71 = arith.constant 7.000000e+00 : f32
    %166 = vector.broadcast %cst_71 : f32 to vector<40x40xf32>
    %167 = arith.mulf %166, %165 : vector<40x40xf32>
    %cst_72 = arith.constant dense<0.000000e+00> : vector<40x40xf32>
    %168 = tpu.matmul %165, %165, %cst_72 {dimension_numbers = #tpu.dot_dimension_numbers<[1], [0], [0], [1], [0, 0, 1, 1], [], []>} : vector<40x40xf32>, vector<40x40xf32>, vector<40x40xf32> -> vector<40x40xf32>
    %169 = arith.subf %167, %168 : vector<40x40xf32>
    %cst_73 = arith.constant 1.500000e+01 : f32
    %170 = vector.broadcast %cst_73 : f32 to vector<40x40xf32>
    %171 = arith.mulf %170, %165 : vector<40x40xf32>
    %cst_74 = arith.constant dense<0.000000e+00> : vector<40x40xf32>
    %172 = tpu.matmul %165, %169, %cst_74 {dimension_numbers = #tpu.dot_dimension_numbers<[1], [0], [0], [1], [0, 0, 1, 1], [], []>} : vector<40x40xf32>, vector<40x40xf32>, vector<40x40xf32> -> vector<40x40xf32>
    %173 = arith.subf %171, %172 : vector<40x40xf32>
    %cst_75 = arith.constant 3.250000e+00 : f32
    %174 = vector.broadcast %cst_75 : f32 to vector<40x40xf32>
    %175 = arith.mulf %174, %164 : vector<40x40xf32>
    %cst_76 = arith.constant dense<0.000000e+00> : vector<40x40xf32>
    %176 = tpu.matmul %164, %173, %cst_76 {dimension_numbers = #tpu.dot_dimension_numbers<[1], [0], [0], [1], [0, 0, 1, 1], [], []>} : vector<40x40xf32>, vector<40x40xf32>, vector<40x40xf32> -> vector<40x40xf32>
    %cst_77 = arith.constant 2.500000e-01 : f32
    %177 = vector.broadcast %cst_77 : f32 to vector<40x40xf32>
    %178 = arith.mulf %177, %176 : vector<40x40xf32>
    %179 = arith.subf %175, %178 : vector<40x40xf32>
    %cst_78 = arith.constant dense<0.000000e+00> : vector<17x40xf32>
    %180 = tpu.matmul %72, %179, %cst_78 {dimension_numbers = #tpu.dot_dimension_numbers<[1], [0], [0], [1], [0, 0, 1, 1], [], []>} : vector<17x40xf32>, vector<40x40xf32>, vector<17x40xf32> -> vector<17x40xf32>
    %cst_79 = arith.constant dense<0.000000e+00> : vector<17x64xf32>
    %181 = tpu.matmul %180, %71, %cst_79 {dimension_numbers = #tpu.dot_dimension_numbers<[1], [0], [0], [1], [0, 0, 1, 1], [], []>} : vector<17x40xf32>, vector<40x64xf32>, vector<17x64xf32> -> vector<17x64xf32>
    %182 = arith.addf %181, %69 : vector<17x64xf32>
    %cst_80 = arith.constant 0.000000e+00 : f32
    %183 = vector.broadcast %cst_80 : f32 to vector<17x64xf32>
    %184 = tpu.concatenate %182, %183 in 1 : vector<17x64xf32>, vector<17x64xf32> -> vector<17x128xf32>
    %c0_81 = arith.constant 0 : index
    %c0_82 = arith.constant 0 : index
    %185 = vector.load %arg3[%c0_81, %c0_82] : memref<17x128xf32, #tpu.memory_space<vmem>>, vector<17x128xf32>
    tpu.vector_store %arg3[%c0_81, %c0_82], %184 {strides = array<i32>} : memref<17x128xf32, #tpu.memory_space<vmem>>, vector<17x128xf32>,
    return
  }
}

</mosaic_0001>

<bundles_post_ra>
// kernel: tile.7
= control target key start
LH: loop header
LB: loop body
LE: loop exit
PB: predicated region body
PF: predicated region fallthrough
CT: control target
= control target key end

     0   :  { %vm17_vm0 = vcmask 261120   ;;  %vm23_vm1 = vcmask 523520   ;;  %s60_s0 = inlined_call_operand.vmem [shape: f32[3,2,32], index: 0, kind: input, shape index: {}]   ;;  %s61_s1 = inlined_call_operand.vmem [shape: f32[3,64], index: 1, kind: output, shape index: {}]  }
   0x1   :  { %v34_v0 = vld [vmem:[%s60_s0 + $0x4] sm:$0x3]  ;;  %v35_v1 = vld [vmem:[%s60_s0 + $0x2] sm:$0x3]  ;;  %v14_v2 = vld [vmem:[%s60_s0] sm:$0x3] }
   0x2   :  { %9 = vst [vmem:[#allocation1 + $0x10] sm:$0x3] %v34_v0  ;;  %13 = vst [vmem:[#allocation1 + $0x8] sm:$0x3] %v35_v1  ;;  %s37_s0 = smov 32  }
   0x3   :  { %15 = vst [vmem:[#allocation1] sm:$0x3] %v14_v2 }
   0xa   :  { %v20_v3 = vld [vmem:[#allocation1 + $0x1] ss:$8 sm:$0x7]   ;;  %v16_v4 = vld [vmem:[#allocation1] ss:$8 sm:$0x7]  }
   0xb   :  { %21 = vrot.lane.b32.xlu0 %v20_v3, %s37_s0  ;;  %18 = vst.msk [vmem:[#allocation0] sm:$0x7] %vm17_vm0, %v16_v4  }
  0x7d   :  { %v22_v5 = vpop.permute.xlu0 %21  }
  0x7e   :  { %24 = vst.msk [vmem:[#allocation0] sm:$0x7] %vm23_vm1, %v22_v5  }
  0x85   :  { %v29_v6 = vld [vmem:[#allocation0] sm:$0xf] }
  0x86   :  { %32 = vst [vmem:[%s61_s1] sm:$0xf] %v29_v6 }

// kernel: nystrom_attention.1
= control target key start
LH: loop header
LB: loop body
LE: loop exit
PB: predicated region body
PF: predicated region fallthrough
CT: control target
= control target key end

     0   :  { %v5089_v3 = vmov 0.0   ;;  %vm59_vm0 = vcmask 523264   ;;  %vm5090_vm1 = vmmov 0   ;;  %s5091_s22 = smov 64   ;;  %vm168_vm2 = vcmask 1040384   ;;  %s6498_s1 = inlined_call_operand.vmem [shape: f32[64,192], index: 1, kind: input, shape index: {}]   ;;  %s6499_s0 = inlined_call_operand.vmem [shape: f32[17,64], index: 0, kind: input, shape index: {}]   ;;  %s6500_s2 = inlined_call_operand.vmem [shape: f32[208,128], index: 2, kind: input, shape index: {}]   ;;  %s6501_s3 = inlined_call_operand.vmem [shape: f32[17,128], index: 3, kind: output, shape index: {}]  }
   0x1   :  { %v58_v0 = vld [vmem:[%s6498_s1 + $0x78] sm:$0xff]  ;;  %v57_v1 = vld [vmem:[%s6498_s1 + $0x70] sm:$0xff]  ;;  %v56_v2 = vld [vmem:[%s6498_s1 + $0x68] sm:$0xff]  ;;  %133 = vmatprep.mubr.f32.mxu0 %v5089_v3  ;;  %4259 = vmatprep.subr.mxu1 %v5089_v3  ;;  %vm152_vm3 = vcmask 138240   ;;  %vm492_vm4 = vcmask 326656   ;;  %vm499_vm5 = vcmask 319488  }
   0x2   :  { %85 = vmatprep.subr.mxu0 %v58_v0  ;;  %v55_v4 = vld [vmem:[%s6498_s1 + $0x60] sm:$0xff]  ;;  %v54_v5 = vld [vmem:[%s6498_s1 + $0x58] sm:$0xff]  ;;  %v53_v6 = vld [vmem:[%s6498_s1 + $0x50] sm:$0xff]  ;;  %4265 = vmatprep.mubr.msk.f32.mxu1 %vm5090_vm1, %v5089_v3  ;;  %vm842_vm6 = vcmask 1046528  }
   0x3   :  { %86 = vmatpush1.msra.mxu0 %v57_v1  ;;  %v52_v7 = vld [vmem:[%s6498_s1 + $0x48] sm:$0xff]  ;;  %v51_v8 = vld [vmem:[%s6498_s1 + $0x40] sm:$0xff]  ;;  %v50_v9 = vld [vmem:[%s6498_s1 + $0x38] sm:$0xff] }
   0x4   :  { %87 = vmatprep.subr.mxu0 %v56_v2  ;;  %v49_v10 = vld [vmem:[%s6498_s1 + $0x30] sm:$0xff]  ;;  %v48_v11 = vld [vmem:[%s6498_s1 + $0x28] sm:$0xff]  ;;  %v47_v12 = vld [vmem:[%s6498_s1 + $0x20] sm:$0xff] }
   0x5   :  { %88 = vmatpush1.msra.mxu0 %v55_v4  ;;  %v46_v13 = vld [vmem:[%s6498_s1 + $0x18] sm:$0xff]  ;;  %v45_v14 = vld [vmem:[%s6498_s1 + $0x10] sm:$0xff]  ;;  %v44_v15 = vld [vmem:[%s6498_s1 + $0x8] sm:$0xff] }
   0x6   :  { %89 = vmatprep.subr.mxu0 %v54_v5  ;;  %v43_v16 = vld [vmem:[%s6498_s1] sm:$0xff]  ;;  %v41_v18 = vld [vmem:[%s6499_s0 + $0x8] sm:$0xff]  ;;  %v42_v19 = vld [vmem:[%s6499_s0 + $0x10] sm:$0x1] }
   0x7   :  { %90 = vmatpush1.msra.mxu0 %v53_v6  ;;  %v40_v17 = vld [vmem:[%s6499_s0] sm:$0xff]  ;;  %v35_v26 = vld [vmem:[%s6500_s2 + $0xa8] sm:$0xff]  ;;  %v36_v27 = vld [vmem:[%s6500_s2 + $0xb0] sm:$0xff] }
   0x8   :  { %91 = vmatprep.subr.mxu0 %v52_v7  ;;  %v34_v25 = vld [vmem:[%s6500_s2 + $0xa0] sm:$0xff]  ;;  %v37_v28 = vld [vmem:[%s6500_s2 + $0xb8] sm:$0xff]  ;;  %v15_v37 = vld [vmem:[%s6500_s2 + $0x8] sm:$0xff] }
   0x9   :  { %92 = vmatpush1.msra.mxu0 %v51_v8  ;;  %v38_v29 = vld [vmem:[%s6500_s2 + $0xc0] sm:$0xff]  ;;  %v16_v41 = vld [vmem:[%s6500_s2 + $0x10] sm:$0xff]  ;;  %v17_v45 = vld [vmem:[%s6500_s2 + $0x18] sm:$0xff] }
   0xa   :  { %93 = vmatprep.subr.mxu0 %v50_v9  ;;  %v14_v33 = vld [vmem:[%s6500_s2] sm:$0xff] }
   0xb   :  { %94 = vmatpush1.msra.mxu0 %v49_v10  ;;  %v18_v49 = vld [vmem:[%s6500_s2 + $0x20] sm:$0xff] }
   0xc   :  { %95 = vmatprep.subr.mxu0 %v48_v11 }
   0xd   :  { %96 = vmatpush1.msra.mxu0 %v47_v12 }
   0xe   :  { %97 = vmatprep.subr.mxu0 %v46_v13 }
   0xf   :  { %98 = vmatpush1.msra.mxu0 %v45_v14 }
  0x10   :  { %99 = vmatprep.subr.mxu0 %v44_v15 }
  0x11   :  { %100 = vmatpush1.msra.mxu0 %v43_v16 }
  0x12   :  { %3777 = vmatmul.mubr.msk.f32.vlgmr.msra.gmra.mxu0 %vm59_vm0, %v40_v17  ;;  %4299 = vmatprep.subr.mxu0 %v5089_v3 }
  0x13   :  { %139 = vmatprep.mubr.f32.mxu0 %v5089_v3 }
  0x16   :  { %3778 = vmatmul.mubr.msk.f32.gmra.mxu0 %vm59_vm0, %v41_v18 }
  0x17   :  { %145 = vmatprep.mubr.f32.mxu0 %v5089_v3 }
  0x1a   :  { %3779 = vmatmul.mubr.msk.f32.gmra.mxu0 %vm59_vm0, %v42_v19 }
  0x1b   :  { %4305 = vmatprep.mubr.msk.f32.mxu0 %vm5090_vm1, %v5089_v3 }
  0xd2   :  { %v5181_v20 = vpop.f32.mrf.mxu0 }
  0xd3   :  { %380 = vrot.lane.b32.xlu1 %v5181_v20, %s5091_s22 }
  0xd4   :  { %v5185_v21 = vpop.f32.mrf.mxu0 }
  0xd6   :  { %v5187_v22 = vpop.f32.mrf.mxu0 }
  0xd8   :  { %v5189_v23 = vpop.f32.mrf.mxu0 }
  0xda   :  { %v5191_v24 = vpop.f32.mrf.mxu0 }
  0xdb   :  { %384 = vrot.lane.b32.xlu0 %v5191_v24, %s5091_s22  ;;  %4260 = vmatpush3.msk.msra.mxu1 %vm168_vm2, %v5191_v24 }
  0xdc   :  { %4261 = vmatprep.subr.mxu1 %v5089_v3  ;;  %v5322_v58 = vpop.f32.mrf.mxu0 }
  0xdd   :  { %4262 = vmatpush3.msra.mxu1 %v5187_v22 }
  0xde   :  { %4263 = vmatprep.subr.mxu1 %v5089_v3 }
  0xdf   :  { %382 = vrot.lane.b32.xlu0 %v5187_v22, %s5091_s22  ;;  %4264 = vmatpush3.msra.mxu1 %v5181_v20 }
  0xe0   :  { %4266 = vmatmul.mubr.msk.f32.vlgmr.msra.gmra.mxu1 %vm152_vm3, %v34_v25  ;;  %4280 = vmatprep.subr.mxu1 %v5089_v3 }
  0xe1   :  { %4268 = vmatprep.mubr.msk.f32.mxu1 %vm5090_vm1, %v5089_v3 }
  0xe4   :  { %4269 = vmatmul.mubr.msk.f32.gmra.mxu1 %vm152_vm3, %v35_v26  ;;  %v31_v26 = vld [vmem:[%s6500_s2 + $0x88] sm:$0xff] }
  0xe5   :  { %4271 = vmatprep.mubr.msk.f32.mxu1 %vm5090_vm1, %v5089_v3 }
  0xe8   :  { %4272 = vmatmul.mubr.msk.f32.gmra.mxu1 %vm152_vm3, %v36_v27 }
  0xe9   :  { %4274 = vmatprep.mubr.msk.f32.mxu1 %vm5090_vm1, %v5089_v3 }
  0xec   :  { %4275 = vmatmul.mubr.msk.f32.gmra.mxu1 %vm152_vm3, %v37_v28 }
  0xed   :  { %4277 = vmatprep.mubr.msk.f32.mxu1 %vm5090_vm1, %v5089_v3 }
  0xf0   :  { %4278 = vmatmul.mubr.msk.f32.gmra.mxu1 %vm152_vm3, %v38_v29 }
  0xf1   :  { %4290 = vmatprep.mubr.msk.f32.mxu1 %vm5090_vm1, %v5089_v3 }
 0x145   :  { %v381_v32 = vpop.permute.xlu1 %380 }
 0x14d   :  { %v385_v30 = vpop.permute.xlu0 %384 }
 0x14e   :  { %4300 = vmatpush3.xpose.msk.msra.mxu0 %vm59_vm0, %v385_v30 }
 0x14f   :  { %4301 = vmatprep.subr.mxu0 %v5089_v3 }
 0x151   :  { %v383_v31 = vpop.permute.xlu0 %382 }
 0x152   :  { %4302 = vmatpush3.xpose.msk.msra.mxu0 %vm59_vm0, %v383_v31  ;;  %v33_v31 = vld [vmem:[%s6500_s2 + $0x98] sm:$0xff] }
 0x153   :  { %4303 = vmatprep.subr.mxu0 %v5089_v3 }
 0x156   :  { %4304 = vmatpush3.xpose.msk.msra.mxu0 %vm59_vm0, %v381_v32 }
 0x157   :  { %4339 = vmatprep.subr.mxu0 %v5089_v3 }
 0x1a0   :  { %v238_v34 = vpop.f32.mrf.mxu1 }
 0x1a1   :  { %v262_v35 = vmul.f32 %v238_v34, %v14_v33 }
 0x1a2   :  { %v4267_v36 = vpop.f32.mrf.mxu1 }
 0x1a3   :  { %4306 = vmatmul.mubr.msk.f32.vlgmr.msra.gmra.mxu0 %vm59_vm0, %v262_v35 }
 0x1a4   :  { %v243_v38 = vpop.f32.mrf.mxu1  ;;  %4308 = vmatprep.mubr.msk.f32.mxu0 %vm5090_vm1, %v5089_v3 }
 0x1a5   :  { %v263_v39 = vmul.f32 %v243_v38, %v15_v37 }
 0x1a6   :  { %v4270_v40 = vpop.f32.mrf.mxu1 }
 0x1a7   :  { %4309 = vmatmul.mubr.msk.f32.gmra.mxu0 %vm59_vm0, %v263_v39 }
 0x1a8   :  { %v248_v42 = vpop.f32.mrf.mxu1  ;;  %4311 = vmatprep.mubr.msk.f32.mxu0 %vm5090_vm1, %v5089_v3 }
 0x1a9   :  { %v264_v43 = vmul.f32 %v248_v42, %v16_v41 }
 0x1aa   :  { %v4273_v44 = vpop.f32.mrf.mxu1 }
 0x1ab   :  { %4312 = vmatmul.mubr.msk.f32.gmra.mxu0 %vm59_vm0, %v264_v43 }
 0x1ac   :  { %v253_v46 = vpop.f32.mrf.mxu1  ;;  %4314 = vmatprep.mubr.msk.f32.mxu0 %vm5090_vm1, %v5089_v3 }
 0x1ad   :  { %v265_v47 = vmul.f32 %v253_v46, %v17_v45 }
 0x1ae   :  { %v4276_v48 = vpop.f32.mrf.mxu1 }
 0x1af   :  { %278 = vrot.lane.b32.xlu0 %v265_v47, %s5091_s22  ;;  %4315 = vmatmul.mubr.msk.f32.gmra.mxu0 %vm59_vm0, %v265_v47 }
 0x1b0   :  { %v258_v50 = vpop.f32.mrf.mxu1  ;;  %4317 = vmatprep.mubr.msk.f32.mxu0 %vm5090_vm1, %v5089_v3 }
 0x1b1   :  { %v266_v51 = vmul.f32 %v258_v50, %v18_v49 }
 0x1b2   :  { %v4279_v52 = vpop.f32.mrf.mxu1 }
 0x1b3   :  { %274 = vrot.lane.b32.xlu0 %v263_v39, %s5091_s22  ;;  %280 = vrot.lane.b32.xlu1 %v266_v51, %s5091_s22 }
 0x1b4   :  { %4318 = vmatmul.mubr.msk.f32.gmra.mxu0 %vm59_vm0, %v266_v51 }
 0x1b5   :  { %4349 = vmatprep.mubr.msk.f32.mxu0 %vm5090_vm1, %v5089_v3 }
 0x1b7   :  { %276 = vrot.lane.b32.xlu1 %v264_v43, %s5091_s22 }
 0x1bb   :  { %272 = vrot.lane.b32.xlu1 %v262_v35, %s5091_s22 }
 0x221   :  { %v279_v54 = vpop.permute.xlu0 %278 }
 0x225   :  { %v281_v53 = vpop.permute.xlu1 %280  ;;  %v275_v56 = vpop.permute.xlu0 %274 }
 0x226   :  { %4281 = vmatpush3.xpose.msk.msra.mxu1 %vm59_vm0, %v281_v53  ;;  %4340 = vmatpush3.xpose.msk.msra.mxu0 %vm59_vm0, %v281_v53 }
 0x227   :  { %4282 = vmatprep.subr.mxu1 %v5089_v3  ;;  %4341 = vmatprep.subr.mxu0 %v5089_v3 }
 0x229   :  { %v277_v55 = vpop.permute.xlu1 %276 }
 0x22a   :  { %4283 = vmatpush3.xpose.msk.msra.mxu1 %vm59_vm0, %v279_v54  ;;  %4342 = vmatpush3.xpose.msk.msra.mxu0 %vm59_vm0, %v279_v54 }
 0x22b   :  { %4284 = vmatprep.subr.mxu1 %v5089_v3  ;;  %4343 = vmatprep.subr.mxu0 %v5089_v3 }
 0x22d   :  { %v273_v57 = vpop.permute.xlu1 %272 }
 0x22e   :  { %4285 = vmatpush3.xpose.msk.msra.mxu1 %vm59_vm0, %v277_v55  ;;  %4344 = vmatpush3.xpose.msk.msra.mxu0 %vm59_vm0, %v277_v55 }
 0x22f   :  { %4286 = vmatprep.subr.mxu1 %v5089_v3  ;;  %4345 = vmatprep.subr.mxu0 %v5089_v3 }
 0x232   :  { %4287 = vmatpush3.xpose.msk.msra.mxu1 %vm59_vm0, %v275_v56  ;;  %4346 = vmatpush3.xpose.msk.msra.mxu0 %vm59_vm0, %v275_v56 }
 0x233   :  { %4288 = vmatprep.subr.mxu1 %v5089_v3  ;;  %4347 = vmatprep.subr.mxu0 %v5089_v3 }
 0x236   :  { %4289 = vmatpush3.xpose.msk.msra.mxu1 %vm59_vm0, %v273_v57  ;;  %4348 = vmatpush3.xpose.msk.msra.mxu0 %vm59_vm0, %v273_v57  ;;  %v23_v57 = vld [vmem:[%s6500_s2 + $0x48] sm:$0xff] }
 0x237   :  { %4320 = vmatprep.subr.mxu1 %v5089_v3  ;;  %4385 = vmatprep.subr.mxu0 %v5089_v3 }
 0x239   :  { %4291 = vmatmul.mubr.msk.f32.vlgmr.msra.gmra.mxu1 %vm59_vm0, %v5181_v20  ;;  %4350 = vmatmul.mubr.msk.f32.vlgmr.msra.gmra.mxu0 %vm59_vm0, %v262_v35  ;;  %v30_v35 = vld [vmem:[%s6500_s2 + $0x80] sm:$0xff] }
 0x23a   :  { %4293 = vmatprep.mubr.msk.f32.mxu1 %vm5090_vm1, %v5089_v3  ;;  %4352 = vmatprep.mubr.msk.f32.mxu0 %vm5090_vm1, %v5089_v3 }
 0x23b   :  { %4321 = vmatpush3.msra.mxu1 %v23_v57 }
 0x23c   :  { %4322 = vmatprep.subr.mxu1 %v5089_v3 }
 0x23d   :  { %4294 = vmatmul.mubr.msk.f32.gmra.mxu1 %vm59_vm0, %v5187_v22  ;;  %4353 = vmatmul.mubr.msk.f32.gmra.mxu0 %vm59_vm0, %v263_v39 }
 0x23e   :  { %4296 = vmatprep.mubr.msk.f32.mxu1 %vm5090_vm1, %v5089_v3  ;;  %4355 = vmatprep.mubr.msk.f32.mxu0 %vm5090_vm1, %v5089_v3 }
 0x241   :  { %4297 = vmatmul.mubr.msk.f32.gmra.mxu1 %vm59_vm0, %v5191_v24  ;;  %4356 = vmatmul.mubr.msk.f32.gmra.mxu0 %vm59_vm0, %v264_v43  ;;  %v32_v24 = vld [vmem:[%s6500_s2 + $0x90] sm:$0xff]  ;;  %v29_v43 = vld [vmem:[%s6500_s2 + $0x78] sm:$0xff] }
 0x242   :  { %4358 = vmatprep.mubr.msk.f32.mxu0 %vm5090_vm1, %v5089_v3  ;;  %4330 = vmatprep.mubr.msk.f32.mxu1 %vm5090_vm1, %v5089_v3 }
 0x245   :  { %4359 = vmatmul.mubr.msk.f32.gmra.mxu0 %vm59_vm0, %v265_v47 }
 0x246   :  { %4361 = vmatprep.mubr.msk.f32.mxu0 %vm5090_vm1, %v5089_v3 }
 0x249   :  { %4362 = vmatmul.mubr.msk.f32.gmra.mxu0 %vm59_vm0, %v266_v51 }
 0x24a   :  { %4395 = vmatprep.mubr.msk.f32.mxu0 %vm5090_vm1, %v5089_v3 }
 0x263   :  { %v468_v59 = vpop.f32.mrf.mxu0 }
 0x264   :  { %v755_v60 = vsel %vm152_vm3, %v468_v59, -inf }
 0x265   :  { %756 = vmax.xlane.f32.xlu0 %v755_v60  ;;  %v4307_v61 = vpop.f32.mrf.mxu0  ;;  %v21_v60 = vld [vmem:[%s6500_s2 + $0x38] sm:$0xff] }
 0x266   :  { %v20_v61 = vld [vmem:[%s6500_s2 + $0x30] sm:$0xff] }
 0x267   :  { %v473_v62 = vpop.f32.mrf.mxu0 }
 0x268   :  { %v758_v63 = vsel %vm152_vm3, %v473_v62, -inf }
 0x269   :  { %759 = vmax.xlane.f32.xlu0 %v758_v63  ;;  %v4310_v0 = vpop.f32.mrf.mxu0 }
 0x26b   :  { %v5326_v1 = vpop.f32.mrf.mxu0 }
 0x26c   :  { %v761_v46 = vsel %vm152_vm3, %v5326_v1, -inf }
 0x26d   :  { %v4313_v2 = vpop.f32.mrf.mxu0 }
 0x26f   :  { %v5328_v4 = vpop.f32.mrf.mxu0 }
 0x270   :  { %v764_v48 = vsel %vm152_vm3, %v5328_v4, -inf }
 0x271   :  { %v4316_v5 = vpop.f32.mrf.mxu0 }
 0x274   :  { %v5330_v6 = vpop.f32.mrf.mxu0 }
 0x275   :  { %v767_v51 = vsel %vm152_vm3, %v5330_v6, -inf }
 0x276   :  { %v4319_v7 = vpop.f32.mrf.mxu0 }
 0x2ee   :  { %v757_v14 = vpop.xlane.xlu0 %756 }
 0x2ef   :  { %v770_v19 = vsub.f32 %v468_v59, %v757_v14  ;;  %v22_v59 = vld [vmem:[%s6500_s2 + $0x40] sm:$0xff] }
 0x2f0   :  { %4323 = vmatpush3.msra.mxu1 %v22_v59 }
 0x2f1   :  { %v775_v29 = vmul.f32 1.442695, %v770_v19  ;;  %4324 = vmatprep.subr.mxu1 %v5089_v3 }
 0x2f2   :  { %v760_v25 = vpop.xlane.xlu0 %759  ;;  %4325 = vmatpush3.msra.mxu1 %v21_v60 }
 0x2f3   :  { %v771_v32 = vsub.f32 %v473_v62, %v760_v25  ;;  %5030 = vpow2.f32 %v775_v29  ;;  %4326 = vmatprep.subr.mxu1 %v5089_v3  ;;  %v19_v62 = vld [vmem:[%s6500_s2 + $0x28] sm:$0xff] }
 0x2f4   :  { %4327 = vmatpush3.msra.mxu1 %v20_v61 }
 0x2f5   :  { %v777_v39 = vmul.f32 1.442695, %v771_v32  ;;  %4328 = vmatprep.subr.mxu1 %v5089_v3 }
 0x2f6   :  { %4329 = vmatpush3.msra.mxu1 %v19_v62 }
 0x2f7   :  { %5032 = vpow2.f32 %v777_v39  ;;  %4364 = vmatprep.subr.mxu1 %v5089_v3 }
 0x2f9   :  { %v5332_v8 = vpop.f32.mrf.mxu1  ;;  %v676_v9 = vpop.f32.mrf.mxu0 }
 0x2fa   :  { %v5364_v44 = vadd.f32 %v676_v9, %v29_v43  ;;  %v493_v53 = vsel %vm492_vm4, %v5332_v8, -inf }
 0x2fb   :  { %v4292_v10 = vpop.f32.mrf.mxu1  ;;  %v4351_v11 = vpop.f32.mrf.mxu0 }
 0x2fc   :  { %v700_v47 = vsel %vm492_vm4, %v5364_v44, -inf }
 0x2fd   :  { %v5334_v12 = vpop.f32.mrf.mxu1  ;;  %v681_v13 = vpop.f32.mrf.mxu0 }
 0x2fe   :  { %v5356_v40 = vadd.f32 %v681_v13, %v30_v35  ;;  %v496_v50 = vsel %vm492_vm4, %v5334_v12, -inf }
 0x2ff   :  { %v4295_v15 = vpop.f32.mrf.mxu1  ;;  %v4354_v16 = vpop.f32.mrf.mxu0 }
 0x300   :  { %v703_v45 = vsel %vm492_vm4, %v5356_v40, -inf  ;;  %v5374_v49 = vpop.eup %5030 }
 0x301   :  { %v5336_v17 = vpop.f32.mrf.mxu1  ;;  %v686_v18 = vpop.f32.mrf.mxu0  ;;  %v785_v52 = vsel %vm152_vm3, %v5374_v49, 0.0 }
 0x302   :  { %v5349_v33 = vadd.f32 %v686_v18, %v31_v26  ;;  %v500_v56 = vsel %vm499_vm5, %v5336_v17, -inf }
 0x303   :  { %v4298_v20 = vpop.f32.mrf.mxu1  ;;  %v4357_v22 = vpop.f32.mrf.mxu0 }
 0x304   :  { %v706_v41 = vsel %vm492_vm4, %v5349_v33, -inf  ;;  %v5384_v54 = vpop.eup %5032 }
 0x305   :  { %v691_v27 = vpop.f32.mrf.mxu0  ;;  %v788_v55 = vsel %vm152_vm3, %v5384_v54, 0.0 }
 0x306   :  { %v5344_v28 = vadd.f32 %v691_v27, %v32_v24 }
 0x307   :  { %v4360_v30 = vpop.f32.mrf.mxu0 }
 0x308   :  { %v709_v34 = vsel %vm492_vm4, %v5344_v28, -inf }
 0x309   :  { %710 = vmax.xlane.f32.xlu0 %v709_v34  ;;  %v696_v36 = vpop.f32.mrf.mxu0 }
 0x30a   :  { %v697_v37 = vadd.f32 %v696_v36, %v33_v31 }
 0x30b   :  { %v4363_v38 = vpop.f32.mrf.mxu0 }
 0x30c   :  { %v712_v42 = vsel %vm492_vm4, %v697_v37, -inf }
 0x30d   :  { %707 = vmax.xlane.f32.xlu0 %v706_v41  ;;  %713 = vmax.xlane.f32.xlu1 %v712_v42 }
 0x311   :  { %704 = vmax.xlane.f32.xlu0 %v703_v45  ;;  %762 = vmax.xlane.f32.xlu1 %v761_v46 }
 0x315   :  { %701 = vmax.xlane.f32.xlu0 %v700_v47  ;;  %765 = vmax.xlane.f32.xlu1 %v764_v48 }
 0x319   :  { %497 = vmax.xlane.f32.xlu0 %v496_v50  ;;  %768 = vmax.xlane.f32.xlu1 %v767_v51 }
 0x31d   :  { %786 = vadd.xlane.f32.xlu0 %v785_v52  ;;  %494 = vmax.xlane.f32.xlu1 %v493_v53 }
 0x321   :  { %789 = vadd.xlane.f32.xlu0 %v788_v55  ;;  %501 = vmax.xlane.f32.xlu1 %v500_v56 }
 0x392   :  { %v711_v63 = vpop.xlane.xlu0 %710 }
 0x393   :  { %v718_v0 = vsub.f32 %v5344_v28, %v711_v63 }
 0x395   :  { %v726_v10 = vmul.f32 1.442695, %v718_v0 }
 0x396   :  { %v708_v2 = vpop.xlane.xlu0 %707  ;;  %v714_v5 = vpop.xlane.xlu1 %713 }
 0x397   :  { %v719_v7 = vsub.f32 %v697_v37, %v714_v5  ;;  %v717_v11 = vsub.f32 %v5349_v33, %v708_v2 }
 0x399   :  { %v728_v9 = vmul.f32 1.442695, %v719_v7  ;;  %v724_v18 = vmul.f32 1.442695, %v717_v11 }
 0x39a   :  { %v705_v13 = vpop.xlane.xlu0 %704  ;;  %v763_v14 = vpop.xlane.xlu1 %762 }
 0x39b   :  { %v772_v15 = vsub.f32 %v5326_v1, %v763_v14  ;;  %5034 = vpow2.f32 %v728_v9  ;;  %v716_v19 = vsub.f32 %v5356_v40, %v705_v13 }
 0x39c   :  { %5036 = vpow2.f32 %v726_v10 }
 0x39d   :  { %v779_v16 = vmul.f32 1.442695, %v772_v15  ;;  %v722_v26 = vmul.f32 1.442695, %v716_v19 }
 0x39e   :  { %v702_v20 = vpop.xlane.xlu0 %701  ;;  %v766_v22 = vpop.xlane.xlu1 %765 }
 0x39f   :  { %v773_v24 = vsub.f32 %v5328_v4, %v766_v22  ;;  %5038 = vpow2.f32 %v779_v16  ;;  %v715_v27 = vsub.f32 %v5364_v44, %v702_v20 }
 0x3a0   :  { %5040 = vpow2.f32 %v724_v18 }
 0x3a1   :  { %v781_v25 = vmul.f32 1.442695, %v773_v24  ;;  %v720_v31 = vmul.f32 1.442695, %v715_v27 }
 0x3a2   :  { %v769_v28 = vpop.xlane.xlu1 %768  ;;  %v498_v1 = vpop.xlane.xlu0 %497 }
 0x3a3   :  { %v774_v29 = vsub.f32 %v5330_v6, %v769_v28  ;;  %5042 = vpow2.f32 %v781_v25  ;;  %v504_v33 = vsub.f32 %v5334_v12, %v498_v1 }
 0x3a4   :  { %5044 = vpow2.f32 %v722_v26 }
 0x3a5   :  { %v783_v30 = vmul.f32 1.442695, %v774_v29  ;;  %v508_v39 = vmul.f32 1.442695, %v504_v33 }
 0x3a6   :  { %v495_v32 = vpop.xlane.xlu1 %494  ;;  %v787_v36 = vpop.xlane.xlu0 %786 }
 0x3a7   :  { %v503_v34 = vsub.f32 %v5332_v8, %v495_v32  ;;  %5046 = vpow2.f32 %v783_v30  ;;  %v800_v8 = vmax.f32 %v787_v36, 1e-30 }
 0x3a8   :  { %v5418_v4 = vpop.eup %5034  ;;  %5048 = vpow2.f32 %v720_v31 }
 0x3a9   :  { %v506_v35 = vmul.f32 1.442695, %v503_v34  ;;  %v742_v37 = vsel %vm492_vm4, %v5418_v4, 0.0  ;;  %v5422_v38 = vpop.eup %5036 }
 0x3aa   :  { %v502_v6 = vpop.xlane.xlu1 %501  ;;  %743 = vadd.xlane.f32.xlu1 %v742_v37  ;;  %v739_v41 = vsel %vm492_vm4, %v5422_v38, 0.0  ;;  %v790_v45 = vpop.xlane.xlu0 %789 }
 0x3ab   :  { %5050 = vpow2.f32 %v506_v35  ;;  %v505_v40 = vsub.f32 %v5336_v17, %v502_v6  ;;  %v801_v50 = vmax.f32 %v790_v45, 1e-30 }
 0x3ac   :  { %v5425_v12 = vpop.eup %5038  ;;  %5052 = vpow2.f32 %v508_v39 }
 0x3ad   :  { %v791_v42 = vsel %vm152_vm3, %v5425_v12, 0.0  ;;  %v5431_v43 = vpop.eup %5040  ;;  %v510_v44 = vmul.f32 1.442695, %v505_v40  ;;  %5054 = vrcp.f32 %v800_v8 }
 0x3ae   :  { %740 = vadd.xlane.f32.xlu1 %v739_v41  ;;  %792 = vadd.xlane.f32.xlu0 %v791_v42  ;;  %v736_v17 = vsel %vm492_vm4, %v5431_v43, 0.0 }
 0x3af   :  { %5056 = vpow2.f32 %v510_v44 }
 0x3b0   :  { %v5433_v46 = vpop.eup %5042  ;;  %5058 = vrcp.f32 %v801_v50 }
 0x3b1   :  { %v794_v47 = vsel %vm152_vm3, %v5433_v46, 0.0  ;;  %v5439_v48 = vpop.eup %5044 }
 0x3b2   :  { %737 = vadd.xlane.f32.xlu1 %v736_v17  ;;  %795 = vadd.xlane.f32.xlu0 %v794_v47  ;;  %v733_v52 = vsel %vm492_vm4, %v5439_v48, 0.0 }
 0x3b4   :  { %v5441_v51 = vpop.eup %5046 }
 0x3b5   :  { %v797_v53 = vsel %vm152_vm3, %v5441_v51, 0.0  ;;  %v5447_v55 = vpop.eup %5048 }
 0x3b6   :  { %734 = vadd.xlane.f32.xlu1 %v733_v52  ;;  %798 = vadd.xlane.f32.xlu0 %v797_v53  ;;  %v730_v57 = vsel %vm492_vm4, %v5447_v55, 0.0 }
 0x3b8   :  { %v5449_v56 = vpop.eup %5050 }
 0x3b9   :  { %4331 = vmatmul.mubr.msk.f32.vlgmr.msra.gmra.mxu1 %vm492_vm4, %v5449_v56  ;;  %v5460_v59 = vpop.eup %5052 }
 0x3ba   :  { %4365 = vmatpush3.msk.msra.mxu1 %vm168_vm2, %v5322_v58  ;;  %4333 = vmatprep.mubr.msk.f32.mxu1 %vm5090_vm1, %v5089_v3  ;;  %v5055_v60 = vpop.eup %5054 }
 0x3bb   :  { %731 = vadd.xlane.f32.xlu1 %v730_v57  ;;  %4366 = vmatprep.subr.mxu1 %v5089_v3  ;;  %v810_v62 = vmul.f32 %v5055_v60, %v5374_v49 }
 0x3bc   :  { %4367 = vmatpush3.msra.mxu1 %v5189_v23  ;;  %v5470_v61 = vpop.eup %5056 }
 0x3bd   :  { %4368 = vmatprep.subr.mxu1 %v5089_v3  ;;  %4334 = vmatmul.mubr.msk.f32.gmra.mxu1 %vm492_vm4, %v5460_v59  ;;  %v5059_v63 = vpop.eup %5058 }
 0x3be   :  { %4369 = vmatpush3.msra.mxu1 %v5185_v21  ;;  %4336 = vmatprep.mubr.msk.f32.mxu1 %vm5090_vm1, %v5089_v3  ;;  %v811_v0 = vmul.f32 %v5059_v63, %v5384_v54 }
 0x3bf   :  { %4404 = vmatprep.subr.mxu1 %v5089_v3 }
 0x3c1   :  { %4337 = vmatmul.mubr.msk.f32.gmra.mxu1 %vm492_vm4, %v5470_v61 }
 0x3c2   :  { %4370 = vmatprep.mubr.msk.f32.mxu1 %vm5090_vm1, %v5089_v3 }
 0x3c5   :  { %4371 = vmatmul.mubr.msk.f32.vlgmr.msra.gmra.mxu1 %vm152_vm3, %v810_v62 }
 0x3c6   :  { %4373 = vmatprep.mubr.msk.f32.mxu1 %vm5090_vm1, %v5089_v3 }
 0x3c9   :  { %4374 = vmatmul.mubr.msk.f32.gmra.mxu1 %vm152_vm3, %v811_v0 }
 0x3ca   :  { %4376 = vmatprep.mubr.msk.f32.mxu1 %vm5090_vm1, %v5089_v3 }
 0x433   :  { %v744_v2 = vpop.xlane.xlu1 %743 }
 0x434   :  { %5060 = vrcp.f32 %v744_v2 }
 0x437   :  { %v793_v5 = vpop.xlane.xlu0 %792  ;;  %v741_v7 = vpop.xlane.xlu1 %740 }
 0x438   :  { %v802_v9 = vmax.f32 %v793_v5, 1e-30  ;;  %5062 = vrcp.f32 %v741_v7 }
 0x43a   :  { %5064 = vrcp.f32 %v802_v9 }
 0x43b   :  { %v796_v49 = vpop.xlane.xlu0 %795  ;;  %v738_v10 = vpop.xlane.xlu1 %737 }
 0x43c   :  { %v803_v11 = vmax.f32 %v796_v49, 1e-30  ;;  %5066 = vrcp.f32 %v738_v10 }
 0x43e   :  { %5068 = vrcp.f32 %v803_v11 }
 0x43f   :  { %v799_v13 = vpop.xlane.xlu0 %798  ;;  %v735_v14 = vpop.xlane.xlu1 %734 }
 0x440   :  { %v804_v54 = vmax.f32 %v799_v13, 1e-30  ;;  %5070 = vrcp.f32 %v735_v14 }
 0x441   :  { %v5061_v15 = vpop.eup %5060 }
 0x442   :  { %5072 = vrcp.f32 %v804_v54  ;;  %v5485_v16 = vmul.f32 %v5061_v15, %v5418_v4 }
 0x444   :  { %v732_v18 = vpop.xlane.xlu1 %731  ;;  %4386 = vmatpush3.xpose.msk.msra.mxu0 %vm492_vm4, %v5485_v16  ;;  %4405 = vmatpush3.xpose.msk.msra.mxu1 %vm492_vm4, %v5485_v16  ;;  %v1170_v19 = vand.u32 2147483647, %v5485_v16 }
 0x445   :  { %5074 = vrcp.f32 %v732_v18  ;;  %v5063_v20 = vpop.eup %5062  ;;  %4387 = vmatprep.subr.mxu0 %v5089_v3  ;;  %4406 = vmatprep.subr.mxu1 %v5089_v3 }
 0x446   :  { %v1178_v22 = vsel %vm492_vm4, %v1170_v19, 0.0  ;;  %v752_v24 = vmul.f32 %v5063_v20, %v5422_v38 }
 0x447   :  { %v5065_v25 = vpop.eup %5064  ;;  %1197 = vadd.xlane.f32.xlu1 %v1178_v22 }
 0x448   :  { %4388 = vmatpush3.xpose.msk.msra.mxu0 %vm492_vm4, %v752_v24  ;;  %4407 = vmatpush3.xpose.msk.msra.mxu1 %vm492_vm4, %v752_v24  ;;  %v812_v26 = vmul.f32 %v5065_v25, %v5425_v12  ;;  %v1169_v40 = vand.u32 2147483647, %v752_v24 }
 0x449   :  { %v5067_v27 = vpop.eup %5066  ;;  %4389 = vmatprep.subr.mxu0 %v5089_v3  ;;  %4408 = vmatprep.subr.mxu1 %v5089_v3 }
 0x44a   :  { %4377 = vmatmul.mubr.msk.f32.gmra.mxu1 %vm152_vm3, %v812_v26  ;;  %v750_v28 = vmul.f32 %v5067_v27, %v5431_v43  ;;  %v1176_v41 = vsel %vm492_vm4, %v1169_v40, 0.0 }
 0x44b   :  { %v5069_v29 = vpop.eup %5068  ;;  %4379 = vmatprep.mubr.msk.f32.mxu1 %vm5090_vm1, %v5089_v3 }
 0x44c   :  { %4390 = vmatpush3.xpose.msk.msra.mxu0 %vm492_vm4, %v750_v28  ;;  %4409 = vmatpush3.xpose.msk.msra.mxu1 %vm492_vm4, %v750_v28  ;;  %v813_v1 = vmul.f32 %v5069_v29, %v5433_v46  ;;  %v1168_v30 = vand.u32 2147483647, %v750_v28 }
 0x44d   :  { %v5071_v31 = vpop.eup %5070  ;;  %4391 = vmatprep.subr.mxu0 %v5089_v3  ;;  %4410 = vmatprep.subr.mxu1 %v5089_v3 }
 0x44e   :  { %4380 = vmatmul.mubr.msk.f32.gmra.mxu1 %vm152_vm3, %v813_v1  ;;  %v1174_v32 = vsel %vm492_vm4, %v1168_v30, 0.0  ;;  %v748_v33 = vmul.f32 %v5071_v31, %v5439_v48 }
 0x44f   :  { %v5073_v34 = vpop.eup %5072  ;;  %1193 = vadd.xlane.f32.xlu1 %v1174_v32  ;;  %4382 = vmatprep.mubr.msk.f32.mxu1 %vm5090_vm1, %v5089_v3 }
 0x450   :  { %4392 = vmatpush3.xpose.msk.msra.mxu0 %vm492_vm4, %v748_v33  ;;  %4411 = vmatpush3.xpose.msk.msra.mxu1 %vm492_vm4, %v748_v33  ;;  %v814_v4 = vmul.f32 %v5073_v34, %v5441_v51  ;;  %v1167_v37 = vand.u32 2147483647, %v748_v33 }
 0x451   :  { %4393 = vmatprep.subr.mxu0 %v5089_v3  ;;  %4412 = vmatprep.subr.mxu1 %v5089_v3 }
 0x452   :  { %v5075_v35 = vpop.eup %5074  ;;  %4383 = vmatmul.mubr.msk.f32.gmra.mxu1 %vm152_vm3, %v814_v4  ;;  %v1172_v39 = vsel %vm492_vm4, %v1167_v37, 0.0 }
 0x453   :  { %v746_v36 = vmul.f32 %v5075_v35, %v5447_v55  ;;  %4414 = vmatprep.mubr.msk.f32.mxu1 %vm5090_vm1, %v5089_v3 }
 0x455   :  { %4394 = vmatpush3.xpose.msk.msra.mxu0 %vm492_vm4, %v746_v36  ;;  %4413 = vmatpush3.xpose.msk.msra.mxu1 %vm492_vm4, %v746_v36  ;;  %v1166_v6 = vand.u32 2147483647, %v746_v36 }
 0x456   :  { %4429 = vmatprep.subr.mxu0 %v5089_v3  ;;  %4454 = vmatprep.subr.mxu1 %v5089_v3 }
 0x457   :  { %v1171_v38 = vsel %vm492_vm4, %v1166_v6, 0.0 }
 0x458   :  { %1189 = vadd.xlane.f32.xlu0 %v1171_v38  ;;  %4415 = vmatmul.mubr.msk.f32.vlgmr.msra.gmra.mxu1 %vm492_vm4, %v746_v36  ;;  %v1173_v12 = vadd.f32 %v1172_v39, %v1171_v38 }
 0x459   :  { %4417 = vmatprep.mubr.msk.f32.mxu1 %vm5090_vm1, %v5089_v3 }
 0x45a   :  { %v1175_v8 = vadd.f32 %v1174_v32, %v1173_v12 }
 0x45c   :  { %1191 = vadd.xlane.f32.xlu0 %v1172_v39  ;;  %4418 = vmatmul.mubr.msk.f32.gmra.mxu1 %vm492_vm4, %v748_v33  ;;  %v1177_v42 = vadd.f32 %v1176_v41, %v1175_v8 }
 0x45d   :  { %4420 = vmatprep.mubr.msk.f32.mxu1 %vm5090_vm1, %v5089_v3 }
 0x45e   :  { %v1179_v43 = vadd.f32 %v1178_v22, %v1177_v42 }
 0x460   :  { %1195 = vadd.xlane.f32.xlu0 %v1176_v41  ;;  %v1180_v44 = vrot.slane %v1179_v43, 4  ;;  %4421 = vmatmul.mubr.msk.f32.gmra.mxu1 %vm492_vm4, %v750_v28 }
 0x461   :  { %4423 = vmatprep.mubr.msk.f32.mxu1 %vm5090_vm1, %v5089_v3 }
 0x462   :  { %v1181_v45 = vadd.f32 %v1180_v44, %v1179_v43 }
 0x464   :  { %4424 = vmatmul.mubr.msk.f32.gmra.mxu1 %vm492_vm4, %v752_v24  ;;  %v1182_v46 = vrot.slane %v1181_v45, 2 }
 0x465   :  { %4426 = vmatprep.mubr.msk.f32.mxu1 %vm5090_vm1, %v5089_v3 }
 0x466   :  { %v1183_v17 = vadd.f32 %v1182_v46, %v1181_v45 }
 0x468   :  { %4427 = vmatmul.mubr.msk.f32.gmra.mxu1 %vm492_vm4, %v5485_v16  ;;  %v1184_v47 = vrot.slane %v1183_v17, 1 }
 0x469   :  { %4464 = vmatprep.mubr.msk.f32.mxu1 %vm5090_vm1, %v5089_v3 }
 0x46a   :  { %v1185_v48 = vadd.f32 %v1184_v47, %v1183_v17 }
 0x46c   :  { %v1186_v50 = vsel %vm492_vm4, %v1185_v48, -inf }
 0x46d   :  { %1187 = vmax.xlane.f32.xlu1 %v1186_v50 }
 0x479   :  { %v587_v51 = vpop.f32.mrf.mxu1 }
 0x47a   :  { %v601_v52 = vmax.f32 %v587_v51, 1e-30 }
 0x47b   :  { %v4332_v53 = vpop.f32.mrf.mxu1 }
 0x47c   :  { %5076 = vrcp.f32 %v601_v52 }
 0x47d   :  { %v592_v55 = vpop.f32.mrf.mxu1 }
 0x47e   :  { %v602_v57 = vmax.f32 %v592_v55, 1e-30 }
 0x47f   :  { %v4335_v60 = vpop.f32.mrf.mxu1 }
 0x480   :  { %5078 = vrcp.f32 %v602_v57 }
 0x481   :  { %v597_v62 = vpop.f32.mrf.mxu1 }
 0x482   :  { %v603_v63 = vmax.f32 %v597_v62, 1e-30 }
 0x483   :  { %v4338_v0 = vpop.f32.mrf.mxu1 }
 0x484   :  { %5080 = vrcp.f32 %v603_v63 }
 0x485   :  { %v5548_v2 = vpop.f32.mrf.mxu1 }
 0x487   :  { %v4372_v5 = vpop.f32.mrf.mxu1 }
 0x489   :  { %v5077_v7 = vpop.eup %5076  ;;  %v5550_v9 = vpop.f32.mrf.mxu1 }
 0x48a   :  { %v607_v49 = vmul.f32 %v5077_v7, %v5449_v56 }
 0x48b   :  { %v4375_v10 = vpop.f32.mrf.mxu1 }
 0x48c   :  { %4396 = vmatmul.mubr.msk.f32.vlgmr.msra.gmra.mxu0 %vm492_vm4, %v607_v49 }
 0x48d   :  { %v5079_v11 = vpop.eup %5078  ;;  %4398 = vmatprep.mubr.msk.f32.mxu0 %vm5090_vm1, %v5089_v3 }
 0x48e   :  { %v608_v13 = vmul.f32 %v5079_v11, %v5460_v59 }
 0x490   :  { %4399 = vmatmul.mubr.msk.f32.gmra.mxu0 %vm492_vm4, %v608_v13 }
 0x491   :  { %v5081_v14 = vpop.eup %5080  ;;  %4401 = vmatprep.mubr.msk.f32.mxu0 %vm5090_vm1, %v5089_v3 }
 0x492   :  { %v609_v54 = vmul.f32 %v5081_v14, %v5470_v61 }
 0x494   :  { %4402 = vmatmul.mubr.msk.f32.gmra.mxu0 %vm492_vm4, %v609_v54 }
 0x495   :  { %4439 = vmatprep.mubr.msk.f32.mxu0 %vm5090_vm1, %v5089_v3 }
 0x4d0   :  { %v1198_v16 = vpop.xlane.xlu1 %1197 }
 0x4d8   :  { %v1194_v19 = vpop.xlane.xlu1 %1193 }
 0x4e1   :  { %v1190_v56 = vpop.xlane.xlu0 %1189 }
 0x4e2   :  { %v1199_v20 = vmax.f32 %v1190_v56, %v1198_v16 }
 0x4e5   :  { %v1192_v15 = vpop.xlane.xlu0 %1191 }
 0x4e6   :  { %v1200_v22 = vmax.f32 %v1199_v20, %v1192_v15 }
 0x4e9   :  { %v1196_v18 = vpop.xlane.xlu0 %1195 }
 0x4ea   :  { %v1201_v59 = vmax.f32 %v1194_v19, %v1196_v18 }
 0x4ec   :  { %v1202_v24 = vmax.f32 %v1200_v22, %v1201_v59 }
 0x4ee   :  { %v1203_v25 = vrot.slane %v1202_v24, 4 }
 0x4f0   :  { %v1204_v26 = vmax.f32 %v1202_v24, %v1203_v25 }
 0x4f2   :  { %v1205_v27 = vrot.slane %v1204_v26, 2 }
 0x4f4   :  { %v1206_v28 = vmax.f32 %v1204_v26, %v1205_v27 }
 0x4f6   :  { %v1207_v1 = vrot.slane %v1206_v28, 1  ;;  %v1188_v4 = vpop.xlane.xlu1 %1187 }
 0x4f8   :  { %v1208_v32 = vmax.f32 %v1206_v28, %v1207_v1 }
 0x4fa   :  { %v1209_v35 = vmul.f32 %v1208_v32, %v1188_v4 }
 0x4fc   :  { %5082 = vrcp.f32 %v1209_v35  ;;  %v28_v35 = vld [vmem:[%s6500_s2 + $0x70] sm:$0xff] }
 0x509   :  { %v5578_v41 = vpop.eup %5082 }
 0x50a   :  { %v5564_v29 = vpop.f32.mrf.mxu1 }
 0x50c   :  { %v4378_v61 = vpop.f32.mrf.mxu1 }
 0x50e   :  { %v5566_v30 = vpop.f32.mrf.mxu1 }
 0x510   :  { %v4381_v31 = vpop.f32.mrf.mxu1 }
 0x511   :  { %v1432_v31 = vmul.f32 3.25, %v5578_v41 }
 0x512   :  { %v5568_v33 = vpop.f32.mrf.mxu1 }
 0x514   :  { %v4384_v34 = vpop.f32.mrf.mxu1 }
 0x518   :  { %v5570_v36 = vpop.f32.mrf.mxu1 }
 0x519   :  { %v5606_v47 = vmul.f32 %v5578_v41, %v5570_v36 }
 0x51a   :  { %v4416_v37 = vpop.f32.mrf.mxu1 }
 0x51b   :  { %v1217_v19 = vmul.f32 7.0, %v5606_v47 }
 0x51c   :  { %v5572_v6 = vpop.f32.mrf.mxu1 }
 0x51d   :  { %v5600_v17 = vmul.f32 %v5578_v41, %v5572_v6 }
 0x51e   :  { %v4419_v38 = vpop.f32.mrf.mxu1 }
 0x51f   :  { %v1218_v16 = vmul.f32 7.0, %v5600_v17 }
 0x520   :  { %v5574_v39 = vpop.f32.mrf.mxu1 }
 0x521   :  { %v5594_v46 = vmul.f32 %v5578_v41, %v5574_v39 }
 0x522   :  { %v4422_v40 = vpop.f32.mrf.mxu1 }
 0x523   :  { %v1219_v56 = vmul.f32 7.0, %v5594_v46  ;;  %v1334_v34 = vmul.f32 15.0, %v5594_v46  ;;  %v1438_v40 = vmul.f32 0.25, %v5578_v41 }
 0x524   :  { %v5576_v12 = vpop.f32.mrf.mxu1 }
 0x525   :  { %v5588_v45 = vmul.f32 %v5578_v41, %v5576_v12 }
 0x526   :  { %v4425_v8 = vpop.f32.mrf.mxu1 }
 0x527   :  { %v1220_v13 = vmul.f32 7.0, %v5588_v45  ;;  %v1335_v1 = vmul.f32 15.0, %v5588_v45  ;;  %v1333_v8 = vmul.f32 15.0, %v5600_v17 }
 0x528   :  { %v5580_v42 = vpop.f32.mrf.mxu1 }
 0x529   :  { %v5584_v43 = vmul.f32 %v5578_v41, %v5580_v42 }
 0x52a   :  { %v4428_v44 = vpop.f32.mrf.mxu1 }
 0x52b   :  { %4430 = vmatpush3.msra.mxu0 %v5584_v43  ;;  %v1221_v10 = vmul.f32 7.0, %v5584_v43  ;;  %v1336_v37 = vmul.f32 15.0, %v5584_v43 }
 0x52c   :  { %4431 = vmatprep.subr.mxu0 %v5089_v3 }
 0x52d   :  { %4432 = vmatpush3.msra.mxu0 %v5588_v45 }
 0x52e   :  { %4433 = vmatprep.subr.mxu0 %v5089_v3 }
 0x52f   :  { %4434 = vmatpush3.msra.mxu0 %v5594_v46 }
 0x530   :  { %4435 = vmatprep.subr.mxu0 %v5089_v3 }
 0x531   :  { %4436 = vmatpush3.msra.mxu0 %v5600_v17 }
 0x532   :  { %4437 = vmatprep.subr.mxu0 %v5089_v3 }
 0x533   :  { %4438 = vmatpush3.msra.mxu0 %v5606_v47 }
 0x534   :  { %4440 = vmatmul.mubr.msk.f32.vlgmr.msra.gmra.mxu0 %vm492_vm4, %v5606_v47  ;;  %4479 = vmatprep.subr.mxu0 %v5089_v3 }
 0x535   :  { %4442 = vmatprep.mubr.msk.f32.mxu0 %vm5090_vm1, %v5089_v3 }
 0x538   :  { %4443 = vmatmul.mubr.msk.f32.gmra.mxu0 %vm492_vm4, %v5600_v17 }
 0x539   :  { %4445 = vmatprep.mubr.msk.f32.mxu0 %vm5090_vm1, %v5089_v3 }
 0x53c   :  { %4446 = vmatmul.mubr.msk.f32.gmra.mxu0 %vm492_vm4, %v5594_v46 }
 0x53d   :  { %4448 = vmatprep.mubr.msk.f32.mxu0 %vm5090_vm1, %v5089_v3 }
 0x540   :  { %4449 = vmatmul.mubr.msk.f32.gmra.mxu0 %vm492_vm4, %v5588_v45 }
 0x541   :  { %4451 = vmatprep.mubr.msk.f32.mxu0 %vm5090_vm1, %v5089_v3 }
 0x544   :  { %4452 = vmatmul.mubr.msk.f32.gmra.mxu0 %vm492_vm4, %v5584_v43 }
 0x545   :  { %4489 = vmatprep.mubr.msk.f32.mxu0 %vm5090_vm1, %v5089_v3 }
 0x54c   :  { %v5632_v48 = vpop.f32.mrf.mxu0 }
 0x54e   :  { %v4397_v50 = vpop.f32.mrf.mxu0 }
 0x550   :  { %v5634_v51 = vpop.f32.mrf.mxu0 }
 0x552   :  { %v4400_v52 = vpop.f32.mrf.mxu0 }
 0x553   :  { %v1437_v52 = vmul.f32 %v1432_v31, %v28_v35 }
 0x554   :  { %v5636_v53 = vpop.f32.mrf.mxu0 }
 0x556   :  { %v4403_v55 = vpop.f32.mrf.mxu0 }
 0x557   :  { %v1332_v55 = vmul.f32 15.0, %v5606_v47 }
 0x5f4   :  { %v1303_v57 = vpop.f32.mrf.mxu0 }
 0x5f5   :  { %v1327_v59 = vsub.f32 %v1217_v19, %v1303_v57 }
 0x5f6   :  { %v4441_v60 = vpop.f32.mrf.mxu0 }
 0x5f8   :  { %v1308_v62 = vpop.f32.mrf.mxu0 }
 0x5f9   :  { %v1328_v20 = vsub.f32 %v1218_v16, %v1308_v62 }
 0x5fa   :  { %v4444_v63 = vpop.f32.mrf.mxu0 }
 0x5fc   :  { %v1313_v0 = vpop.f32.mrf.mxu0 }
 0x5fd   :  { %v1329_v18 = vsub.f32 %v1219_v56, %v1313_v0 }
 0x5fe   :  { %v4447_v5 = vpop.f32.mrf.mxu0 }
 0x5ff   :  { %v25_v5 = vld [vmem:[%s6500_s2 + $0x58] sm:$0xff] }
 0x600   :  { %v1318_v7 = vpop.f32.mrf.mxu0 }
 0x601   :  { %v1330_v15 = vsub.f32 %v1220_v13, %v1318_v7  ;;  %v1434_v13 = vmul.f32 %v1432_v31, %v25_v5 }
 0x602   :  { %v4450_v49 = vpop.f32.mrf.mxu0 }
 0x604   :  { %v1323_v11 = vpop.f32.mrf.mxu0 }
 0x605   :  { %v1331_v14 = vsub.f32 %v1221_v10, %v1323_v11 }
 0x606   :  { %v4453_v54 = vpop.f32.mrf.mxu0 }
 0x607   :  { %4455 = vmatpush3.msra.mxu1 %v1331_v14 }
 0x608   :  { %4456 = vmatprep.subr.mxu1 %v5089_v3 }
 0x609   :  { %4457 = vmatpush3.msra.mxu1 %v1330_v15 }
 0x60a   :  { %4458 = vmatprep.subr.mxu1 %v5089_v3 }
 0x60b   :  { %4459 = vmatpush3.msra.mxu1 %v1329_v18 }
 0x60c   :  { %4460 = vmatprep.subr.mxu1 %v5089_v3 }
 0x60d   :  { %4461 = vmatpush3.msra.mxu1 %v1328_v20 }
 0x60e   :  { %4462 = vmatprep.subr.mxu1 %v5089_v3 }
 0x60f   :  { %4463 = vmatpush3.msra.mxu1 %v1327_v59 }
 0x610   :  { %4465 = vmatmul.mubr.msk.f32.vlgmr.msra.gmra.mxu1 %vm492_vm4, %v5606_v47  ;;  %4504 = vmatprep.subr.mxu1 %v5089_v3  ;;  %v24_v47 = vld [vmem:[%s6500_s2 + $0x50] sm:$0xff] }
 0x611   :  { %4467 = vmatprep.mubr.msk.f32.mxu1 %vm5090_vm1, %v5089_v3  ;;  %v1433_v54 = vmul.f32 %v1432_v31, %v24_v47 }
 0x614   :  { %4468 = vmatmul.mubr.msk.f32.gmra.mxu1 %vm492_vm4, %v5600_v17 }
 0x615   :  { %4470 = vmatprep.mubr.msk.f32.mxu1 %vm5090_vm1, %v5089_v3 }
 0x618   :  { %4471 = vmatmul.mubr.msk.f32.gmra.mxu1 %vm492_vm4, %v5594_v46 }
 0x619   :  { %4473 = vmatprep.mubr.msk.f32.mxu1 %vm5090_vm1, %v5089_v3 }
 0x61c   :  { %4474 = vmatmul.mubr.msk.f32.gmra.mxu1 %vm492_vm4, %v5588_v45  ;;  %v27_v45 = vld [vmem:[%s6500_s2 + $0x68] sm:$0xff] }
 0x61d   :  { %4476 = vmatprep.mubr.msk.f32.mxu1 %vm5090_vm1, %v5089_v3  ;;  %v1436_v17 = vmul.f32 %v1432_v31, %v27_v45 }
 0x620   :  { %4477 = vmatmul.mubr.msk.f32.gmra.mxu1 %vm492_vm4, %v5584_v43  ;;  %v26_v43 = vld [vmem:[%s6500_s2 + $0x60] sm:$0xff] }
 0x621   :  { %4514 = vmatprep.mubr.msk.f32.mxu1 %vm5090_vm1, %v5089_v3  ;;  %v1435_v49 = vmul.f32 %v1432_v31, %v26_v43 }
 0x6d0   :  { %v1403_v22 = vpop.f32.mrf.mxu1 }
 0x6d1   :  { %v1427_v41 = vsub.f32 %v1332_v55, %v1403_v22 }
 0x6d2   :  { %v4466_v24 = vpop.f32.mrf.mxu1 }
 0x6d3   :  { %v1439_v11 = vmul.f32 %v1438_v40, %v1427_v41 }
 0x6d4   :  { %v1408_v25 = vpop.f32.mrf.mxu1 }
 0x6d5   :  { %v1428_v57 = vsub.f32 %v1333_v8, %v1408_v25  ;;  %v5704_v15 = vsub.f32 %v1433_v54, %v1439_v11 }
 0x6d6   :  { %v4469_v26 = vpop.f32.mrf.mxu1 }
 0x6d7   :  { %v1440_v7 = vmul.f32 %v1438_v40, %v1428_v57 }
 0x6d8   :  { %v1413_v27 = vpop.f32.mrf.mxu1 }
 0x6d9   :  { %v1429_v44 = vsub.f32 %v1334_v34, %v1413_v27  ;;  %v5700_v56 = vsub.f32 %v1434_v13, %v1440_v7 }
 0x6da   :  { %v4472_v28 = vpop.f32.mrf.mxu1 }
 0x6db   :  { %v1441_v63 = vmul.f32 %v1438_v40, %v1429_v44 }
 0x6dc   :  { %v1418_v61 = vpop.f32.mrf.mxu1 }
 0x6dd   :  { %v1430_v4 = vsub.f32 %v1335_v1, %v1418_v61  ;;  %v5696_v14 = vsub.f32 %v1435_v49, %v1441_v63 }
 0x6de   :  { %v4475_v32 = vpop.f32.mrf.mxu1 }
 0x6df   :  { %v1442_v60 = vmul.f32 %v1438_v40, %v1430_v4 }
 0x6e0   :  { %v1423_v38 = vpop.f32.mrf.mxu1 }
 0x6e1   :  { %v1431_v50 = vsub.f32 %v1336_v37, %v1423_v38  ;;  %v5689_v10 = vsub.f32 %v1436_v17, %v1442_v60 }
 0x6e2   :  { %v4478_v46 = vpop.f32.mrf.mxu1 }
 0x6e3   :  { %v1443_v62 = vmul.f32 %v1438_v40, %v1431_v50 }
 0x6e5   :  { %v5684_v0 = vsub.f32 %v1437_v52, %v1443_v62 }
 0x6e7   :  { %4480 = vmatpush3.msra.mxu0 %v5684_v0 }
 0x6e8   :  { %4481 = vmatprep.subr.mxu0 %v5089_v3 }
 0x6e9   :  { %4482 = vmatpush3.msra.mxu0 %v5689_v10 }
 0x6ea   :  { %4483 = vmatprep.subr.mxu0 %v5089_v3 }
 0x6eb   :  { %4484 = vmatpush3.msra.mxu0 %v5696_v14 }
 0x6ec   :  { %4485 = vmatprep.subr.mxu0 %v5089_v3 }
 0x6ed   :  { %4486 = vmatpush3.msra.mxu0 %v5700_v56 }
 0x6ee   :  { %4487 = vmatprep.subr.mxu0 %v5089_v3 }
 0x6ef   :  { %4488 = vmatpush3.msra.mxu0 %v5704_v15 }
 0x6f0   :  { %4490 = vmatmul.mubr.msk.f32.vlgmr.msra.gmra.mxu0 %vm492_vm4, %v5570_v36  ;;  %4529 = vmatprep.subr.mxu0 %v5089_v3 }
 0x6f1   :  { %4492 = vmatprep.mubr.msk.f32.mxu0 %vm5090_vm1, %v5089_v3 }
 0x6f4   :  { %4493 = vmatmul.mubr.msk.f32.gmra.mxu0 %vm492_vm4, %v5572_v6 }
 0x6f5   :  { %4495 = vmatprep.mubr.msk.f32.mxu0 %vm5090_vm1, %v5089_v3 }
 0x6f8   :  { %4496 = vmatmul.mubr.msk.f32.gmra.mxu0 %vm492_vm4, %v5574_v39 }
 0x6f9   :  { %4498 = vmatprep.mubr.msk.f32.mxu0 %vm5090_vm1, %v5089_v3 }
 0x6fc   :  { %4499 = vmatmul.mubr.msk.f32.gmra.mxu0 %vm492_vm4, %v5576_v12 }
 0x6fd   :  { %4501 = vmatprep.mubr.msk.f32.mxu0 %vm5090_vm1, %v5089_v3 }
 0x700   :  { %4502 = vmatmul.mubr.msk.f32.gmra.mxu0 %vm492_vm4, %v5580_v42 }
 0x701   :  { %4539 = vmatprep.mubr.msk.f32.mxu0 %vm5090_vm1, %v5089_v3 }
 0x7b0   :  { %v5730_v16 = vpop.f32.mrf.mxu0 }
 0x7b1   :  { %v1554_v55 = vmul.f32 7.0, %v5730_v16 }
 0x7b2   :  { %v4491_v18 = vpop.f32.mrf.mxu0 }
 0x7b4   :  { %v5732_v19 = vpop.f32.mrf.mxu0 }
 0x7b5   :  { %v1555_v52 = vmul.f32 7.0, %v5732_v19 }
 0x7b6   :  { %v4494_v20 = vpop.f32.mrf.mxu0 }
 0x7b8   :  { %v5734_v59 = vpop.f32.mrf.mxu0 }
 0x7b9   :  { %v1556_v50 = vmul.f32 7.0, %v5734_v59  ;;  %v1671_v20 = vmul.f32 15.0, %v5734_v59 }
 0x7ba   :  { %v4497_v22 = vpop.f32.mrf.mxu0 }
 0x7bc   :  { %v5736_v24 = vpop.f32.mrf.mxu0 }
 0x7bd   :  { %v1557_v40 = vmul.f32 7.0, %v5736_v24  ;;  %v1672_v13 = vmul.f32 15.0, %v5736_v24 }
 0x7be   :  { %v4500_v25 = vpop.f32.mrf.mxu0 }
 0x7bf   :  { %v1670_v25 = vmul.f32 15.0, %v5732_v19 }
 0x7c0   :  { %v5738_v26 = vpop.f32.mrf.mxu0 }
 0x7c1   :  { %4505 = vmatpush3.msra.mxu1 %v5738_v26  ;;  %v1558_v37 = vmul.f32 7.0, %v5738_v26  ;;  %v1673_v47 = vmul.f32 15.0, %v5738_v26 }
 0x7c2   :  { %v4503_v27 = vpop.f32.mrf.mxu0  ;;  %4506 = vmatprep.subr.mxu1 %v5089_v3 }
 0x7c3   :  { %4507 = vmatpush3.msra.mxu1 %v5736_v24 }
 0x7c4   :  { %4508 = vmatprep.subr.mxu1 %v5089_v3 }
 0x7c5   :  { %4509 = vmatpush3.msra.mxu1 %v5734_v59 }
 0x7c6   :  { %4510 = vmatprep.subr.mxu1 %v5089_v3 }
 0x7c7   :  { %4511 = vmatpush3.msra.mxu1 %v5732_v19 }
 0x7c8   :  { %4512 = vmatprep.subr.mxu1 %v5089_v3 }
 0x7c9   :  { %4513 = vmatpush3.msra.mxu1 %v5730_v16 }
 0x7ca   :  { %4515 = vmatmul.mubr.msk.f32.vlgmr.msra.gmra.mxu1 %vm492_vm4, %v5730_v16  ;;  %4554 = vmatprep.subr.mxu1 %v5089_v3 }
 0x7cb   :  { %4517 = vmatprep.mubr.msk.f32.mxu1 %vm5090_vm1, %v5089_v3 }
 0x7ce   :  { %4518 = vmatmul.mubr.msk.f32.gmra.mxu1 %vm492_vm4, %v5732_v19 }
 0x7cf   :  { %4520 = vmatprep.mubr.msk.f32.mxu1 %vm5090_vm1, %v5089_v3 }
 0x7d2   :  { %4521 = vmatmul.mubr.msk.f32.gmra.mxu1 %vm492_vm4, %v5734_v59 }
 0x7d3   :  { %4523 = vmatprep.mubr.msk.f32.mxu1 %vm5090_vm1, %v5089_v3 }
 0x7d6   :  { %4524 = vmatmul.mubr.msk.f32.gmra.mxu1 %vm492_vm4, %v5736_v24 }
 0x7d7   :  { %4526 = vmatprep.mubr.msk.f32.mxu1 %vm5090_vm1, %v5089_v3 }
 0x7da   :  { %4527 = vmatmul.mubr.msk.f32.gmra.mxu1 %vm492_vm4, %v5738_v26 }
 0x7db   :  { %4564 = vmatprep.mubr.msk.f32.mxu1 %vm5090_vm1, %v5089_v3 }
 0x88a   :  { %v1640_v28 = vpop.f32.mrf.mxu1 }
 0x88b   :  { %v1664_v60 = vsub.f32 %v1554_v55, %v1640_v28  ;;  %v1669_v28 = vmul.f32 15.0, %v5730_v16 }
 0x88c   :  { %v4516_v61 = vpop.f32.mrf.mxu1 }
 0x88e   :  { %v1645_v1 = vpop.f32.mrf.mxu1 }
 0x88f   :  { %v1665_v57 = vsub.f32 %v1555_v52, %v1645_v1  ;;  %v1771_v52 = vmul.f32 3.25, %v5696_v14 }
 0x890   :  { %v4519_v31 = vpop.f32.mrf.mxu1 }
 0x892   :  { %v1650_v32 = vpop.f32.mrf.mxu1 }
 0x893   :  { %v1666_v46 = vsub.f32 %v1556_v50, %v1650_v32 }
 0x894   :  { %v4522_v34 = vpop.f32.mrf.mxu1 }
 0x896   :  { %v1655_v4 = vpop.f32.mrf.mxu1 }
 0x897   :  { %v1667_v45 = vsub.f32 %v1557_v40, %v1655_v4 }
 0x898   :  { %v4525_v35 = vpop.f32.mrf.mxu1 }
 0x89a   :  { %v1660_v38 = vpop.f32.mrf.mxu1 }
 0x89b   :  { %v1668_v8 = vsub.f32 %v1558_v37, %v1660_v38  ;;  %v1773_v37 = vmul.f32 3.25, %v5684_v0 }
 0x89c   :  { %v4528_v44 = vpop.f32.mrf.mxu1 }
 0x89d   :  { %4530 = vmatpush3.msra.mxu0 %v1668_v8  ;;  %v1772_v44 = vmul.f32 3.25, %v5689_v10 }
 0x89e   :  { %4531 = vmatprep.subr.mxu0 %v5089_v3 }
 0x89f   :  { %4532 = vmatpush3.msra.mxu0 %v1667_v45 }
 0x8a0   :  { %4533 = vmatprep.subr.mxu0 %v5089_v3 }
 0x8a1   :  { %4534 = vmatpush3.msra.mxu0 %v1666_v46 }
 0x8a2   :  { %4535 = vmatprep.subr.mxu0 %v5089_v3 }
 0x8a3   :  { %4536 = vmatpush3.msra.mxu0 %v1665_v57  ;;  %v1770_v57 = vmul.f32 3.25, %v5700_v56 }
 0x8a4   :  { %4537 = vmatprep.subr.mxu0 %v5089_v3 }
 0x8a5   :  { %4538 = vmatpush3.msra.mxu0 %v1664_v60 }
 0x8a6   :  { %4540 = vmatmul.mubr.msk.f32.vlgmr.msra.gmra.mxu0 %vm492_vm4, %v5730_v16  ;;  %4579 = vmatprep.subr.mxu0 %v5089_v3 }
 0x8a7   :  { %4542 = vmatprep.mubr.msk.f32.mxu0 %vm5090_vm1, %v5089_v3 }
 0x8aa   :  { %4543 = vmatmul.mubr.msk.f32.gmra.mxu0 %vm492_vm4, %v5732_v19 }
 0x8ab   :  { %4545 = vmatprep.mubr.msk.f32.mxu0 %vm5090_vm1, %v5089_v3 }
 0x8ae   :  { %4546 = vmatmul.mubr.msk.f32.gmra.mxu0 %vm492_vm4, %v5734_v59 }
 0x8af   :  { %4548 = vmatprep.mubr.msk.f32.mxu0 %vm5090_vm1, %v5089_v3 }
 0x8b2   :  { %4549 = vmatmul.mubr.msk.f32.gmra.mxu0 %vm492_vm4, %v5736_v24 }
 0x8b3   :  { %4551 = vmatprep.mubr.msk.f32.mxu0 %vm5090_vm1, %v5089_v3 }
 0x8b6   :  { %4552 = vmatmul.mubr.msk.f32.gmra.mxu0 %vm492_vm4, %v5738_v26 }
 0x8b7   :  { %4589 = vmatprep.mubr.msk.f32.mxu0 %vm5090_vm1, %v5089_v3 }
 0x966   :  { %v1740_v62 = vpop.f32.mrf.mxu0 }
 0x967   :  { %v1764_v24 = vsub.f32 %v1669_v28, %v1740_v62 }
 0x968   :  { %v4541_v43 = vpop.f32.mrf.mxu0 }
 0x96a   :  { %v1745_v41 = vpop.f32.mrf.mxu0 }
 0x96b   :  { %v1765_v26 = vsub.f32 %v1670_v25, %v1745_v41 }
 0x96c   :  { %v4544_v63 = vpop.f32.mrf.mxu0 }
 0x96e   :  { %v1750_v17 = vpop.f32.mrf.mxu0 }
 0x96f   :  { %v1766_v27 = vsub.f32 %v1671_v20, %v1750_v17 }
 0x970   :  { %v4547_v5 = vpop.f32.mrf.mxu0 }
 0x972   :  { %v1755_v7 = vpop.f32.mrf.mxu0 }
 0x973   :  { %v1767_v22 = vsub.f32 %v1672_v13, %v1755_v7 }
 0x974   :  { %v4550_v49 = vpop.f32.mrf.mxu0 }
 0x976   :  { %v1760_v11 = vpop.f32.mrf.mxu0 }
 0x977   :  { %v1768_v54 = vsub.f32 %v1673_v47, %v1760_v11 }
 0x978   :  { %v4553_v18 = vpop.f32.mrf.mxu0 }
 0x979   :  { %4555 = vmatpush3.msra.mxu1 %v1768_v54 }
 0x97a   :  { %4556 = vmatprep.subr.mxu1 %v5089_v3 }
 0x97b   :  { %4557 = vmatpush3.msra.mxu1 %v1767_v22 }
 0x97c   :  { %4558 = vmatprep.subr.mxu1 %v5089_v3 }
 0x97d   :  { %4559 = vmatpush3.msra.mxu1 %v1766_v27 }
 0x97e   :  { %4560 = vmatprep.subr.mxu1 %v5089_v3 }
 0x97f   :  { %4561 = vmatpush3.msra.mxu1 %v1765_v26 }
 0x980   :  { %4562 = vmatprep.subr.mxu1 %v5089_v3 }
 0x981   :  { %4563 = vmatpush3.msra.mxu1 %v1764_v24 }
 0x982   :  { %4565 = vmatmul.mubr.msk.f32.vlgmr.msra.gmra.mxu1 %vm492_vm4, %v5704_v15  ;;  %4604 = vmatprep.subr.mxu1 %v5089_v3 }
 0x983   :  { %4567 = vmatprep.mubr.msk.f32.mxu1 %vm5090_vm1, %v5089_v3 }
 0x986   :  { %4568 = vmatmul.mubr.msk.f32.gmra.mxu1 %vm492_vm4, %v5700_v56 }
 0x987   :  { %4570 = vmatprep.mubr.msk.f32.mxu1 %vm5090_vm1, %v5089_v3 }
 0x98a   :  { %4571 = vmatmul.mubr.msk.f32.gmra.mxu1 %vm492_vm4, %v5696_v14 }
 0x98b   :  { %4573 = vmatprep.mubr.msk.f32.mxu1 %vm5090_vm1, %v5089_v3 }
 0x98e   :  { %4574 = vmatmul.mubr.msk.f32.gmra.mxu1 %vm492_vm4, %v5689_v10  ;;  %v1769_v10 = vmul.f32 3.25, %v5704_v15 }
 0x98f   :  { %4576 = vmatprep.mubr.msk.f32.mxu1 %vm5090_vm1, %v5089_v3 }
 0x992   :  { %4577 = vmatmul.mubr.msk.f32.gmra.mxu1 %vm492_vm4, %v5684_v0 }
 0x993   :  { %4614 = vmatprep.mubr.msk.f32.mxu1 %vm5090_vm1, %v5089_v3 }
 0xa42   :  { %v1855_v16 = vpop.f32.mrf.mxu1 }
 0xa43   :  { %v1879_v55 = vmul.f32 0.25, %v1855_v16 }
 0xa44   :  { %v4566_v19 = vpop.f32.mrf.mxu1 }
 0xa45   :  { %v5849_v14 = vsub.f32 %v1769_v10, %v1879_v55 }
 0xa46   :  { %v1860_v59 = vpop.f32.mrf.mxu1 }
 0xa47   :  { %v1880_v45 = vmul.f32 0.25, %v1860_v59 }
 0xa48   :  { %v4569_v61 = vpop.f32.mrf.mxu1 }
 0xa49   :  { %v5845_v60 = vsub.f32 %v1770_v57, %v1880_v45 }
 0xa4a   :  { %v1865_v1 = vpop.f32.mrf.mxu1 }
 0xa4b   :  { %v1881_v8 = vmul.f32 0.25, %v1865_v1 }
 0xa4c   :  { %v4572_v31 = vpop.f32.mrf.mxu1 }
 0xa4d   :  { %v5840_v0 = vsub.f32 %v1771_v52, %v1881_v8 }
 0xa4e   :  { %v1870_v32 = vpop.f32.mrf.mxu1 }
 0xa4f   :  { %v1882_v35 = vmul.f32 0.25, %v1870_v32 }
 0xa50   :  { %v4575_v34 = vpop.f32.mrf.mxu1 }
 0xa51   :  { %v5835_v46 = vsub.f32 %v1772_v44, %v1882_v35 }
 0xa52   :  { %v1875_v4 = vpop.f32.mrf.mxu1 }
 0xa53   :  { %v1883_v38 = vmul.f32 0.25, %v1875_v4 }
 0xa54   :  { %v4578_v40 = vpop.f32.mrf.mxu1 }
 0xa55   :  { %v5832_v50 = vsub.f32 %v1773_v37, %v1883_v38 }
 0xa57   :  { %4580 = vmatpush3.msra.mxu0 %v5832_v50 }
 0xa58   :  { %4581 = vmatprep.subr.mxu0 %v5089_v3 }
 0xa59   :  { %4582 = vmatpush3.msra.mxu0 %v5835_v46 }
 0xa5a   :  { %4583 = vmatprep.subr.mxu0 %v5089_v3 }
 0xa5b   :  { %4584 = vmatpush3.msra.mxu0 %v5840_v0 }
 0xa5c   :  { %4585 = vmatprep.subr.mxu0 %v5089_v3 }
 0xa5d   :  { %4586 = vmatpush3.msra.mxu0 %v5845_v60 }
 0xa5e   :  { %4587 = vmatprep.subr.mxu0 %v5089_v3 }
 0xa5f   :  { %4588 = vmatpush3.msra.mxu0 %v5849_v14 }
 0xa60   :  { %4590 = vmatmul.mubr.msk.f32.vlgmr.msra.gmra.mxu0 %vm492_vm4, %v5570_v36  ;;  %4629 = vmatprep.subr.mxu0 %v5089_v3 }
 0xa61   :  { %4592 = vmatprep.mubr.msk.f32.mxu0 %vm5090_vm1, %v5089_v3 }
 0xa64   :  { %4593 = vmatmul.mubr.msk.f32.gmra.mxu0 %vm492_vm4, %v5572_v6 }
 0xa65   :  { %4595 = vmatprep.mubr.msk.f32.mxu0 %vm5090_vm1, %v5089_v3 }
 0xa68   :  { %4596 = vmatmul.mubr.msk.f32.gmra.mxu0 %vm492_vm4, %v5574_v39 }
 0xa69   :  { %4598 = vmatprep.mubr.msk.f32.mxu0 %vm5090_vm1, %v5089_v3 }
 0xa6c   :  { %4599 = vmatmul.mubr.msk.f32.gmra.mxu0 %vm492_vm4, %v5576_v12 }
 0xa6d   :  { %4601 = vmatprep.mubr.msk.f32.mxu0 %vm5090_vm1, %v5089_v3 }
 0xa70   :  { %4602 = vmatmul.mubr.msk.f32.gmra.mxu0 %vm492_vm4, %v5580_v42 }
 0xa71   :  { %4639 = vmatprep.mubr.msk.f32.mxu0 %vm5090_vm1, %v5089_v3 }
 0xb20   :  { %v5875_v56 = vpop.f32.mrf.mxu0 }
 0xb21   :  { %v1979_v31 = vmul.f32 7.0, %v5875_v56 }
 0xb22   :  { %v4591_v15 = vpop.f32.mrf.mxu0 }
 0xb24   :  { %v5877_v62 = vpop.f32.mrf.mxu0 }
 0xb25   :  { %v1980_v61 = vmul.f32 7.0, %v5877_v62 }
 0xb26   :  { %v4594_v43 = vpop.f32.mrf.mxu0 }
 0xb28   :  { %v5879_v41 = vpop.f32.mrf.mxu0 }
 0xb29   :  { %v1981_v19 = vmul.f32 7.0, %v5879_v41  ;;  %v2096_v43 = vmul.f32 15.0, %v5879_v41 }
 0xb2a   :  { %v4597_v63 = vpop.f32.mrf.mxu0 }
 0xb2c   :  { %v5881_v17 = vpop.f32.mrf.mxu0 }
 0xb2d   :  { %v1982_v26 = vmul.f32 7.0, %v5881_v17  ;;  %v2097_v57 = vmul.f32 15.0, %v5881_v17 }
 0xb2e   :  { %v4600_v5 = vpop.f32.mrf.mxu0 }
 0xb2f   :  { %v2095_v5 = vmul.f32 15.0, %v5877_v62 }
 0xb30   :  { %v5883_v7 = vpop.f32.mrf.mxu0 }
 0xb31   :  { %4605 = vmatpush3.msra.mxu1 %v5883_v7  ;;  %v1983_v27 = vmul.f32 7.0, %v5883_v7  ;;  %v2098_v52 = vmul.f32 15.0, %v5883_v7 }
 0xb32   :  { %v4603_v49 = vpop.f32.mrf.mxu0  ;;  %4606 = vmatprep.subr.mxu1 %v5089_v3 }
 0xb33   :  { %4607 = vmatpush3.msra.mxu1 %v5881_v17 }
 0xb34   :  { %4608 = vmatprep.subr.mxu1 %v5089_v3 }
 0xb35   :  { %4609 = vmatpush3.msra.mxu1 %v5879_v41 }
 0xb36   :  { %4610 = vmatprep.subr.mxu1 %v5089_v3 }
 0xb37   :  { %4611 = vmatpush3.msra.mxu1 %v5877_v62 }
 0xb38   :  { %4612 = vmatprep.subr.mxu1 %v5089_v3 }
 0xb39   :  { %4613 = vmatpush3.msra.mxu1 %v5875_v56 }
 0xb3a   :  { %4615 = vmatmul.mubr.msk.f32.vlgmr.msra.gmra.mxu1 %vm492_vm4, %v5875_v56  ;;  %4654 = vmatprep.subr.mxu1 %v5089_v3 }
 0xb3b   :  { %4617 = vmatprep.mubr.msk.f32.mxu1 %vm5090_vm1, %v5089_v3 }
 0xb3e   :  { %4618 = vmatmul.mubr.msk.f32.gmra.mxu1 %vm492_vm4, %v5877_v62 }
 0xb3f   :  { %4620 = vmatprep.mubr.msk.f32.mxu1 %vm5090_vm1, %v5089_v3 }
 0xb42   :  { %4621 = vmatmul.mubr.msk.f32.gmra.mxu1 %vm492_vm4, %v5879_v41 }
 0xb43   :  { %4623 = vmatprep.mubr.msk.f32.mxu1 %vm5090_vm1, %v5089_v3 }
 0xb46   :  { %4624 = vmatmul.mubr.msk.f32.gmra.mxu1 %vm492_vm4, %v5881_v17 }
 0xb47   :  { %4626 = vmatprep.mubr.msk.f32.mxu1 %vm5090_vm1, %v5089_v3 }
 0xb4a   :  { %4627 = vmatmul.mubr.msk.f32.gmra.mxu1 %vm492_vm4, %v5883_v7 }
 0xb4b   :  { %4664 = vmatprep.mubr.msk.f32.mxu1 %vm5090_vm1, %v5089_v3 }
 0xbfa   :  { %v2065_v47 = vpop.f32.mrf.mxu1 }
 0xbfb   :  { %v2089_v34 = vsub.f32 %v1979_v31, %v2065_v47  ;;  %v2094_v47 = vmul.f32 15.0, %v5875_v56 }
 0xbfc   :  { %v4616_v11 = vpop.f32.mrf.mxu1 }
 0xbfe   :  { %v2070_v13 = vpop.f32.mrf.mxu1 }
 0xbff   :  { %v2090_v32 = vsub.f32 %v1980_v61, %v2070_v13  ;;  %v2196_v61 = vmul.f32 3.25, %v5840_v0 }
 0xc00   :  { %v4619_v54 = vpop.f32.mrf.mxu1 }
 0xc02   :  { %v2075_v18 = vpop.f32.mrf.mxu1 }
 0xc03   :  { %v2091_v1 = vsub.f32 %v1981_v19, %v2075_v18 }
 0xc04   :  { %v4622_v20 = vpop.f32.mrf.mxu1 }
 0xc06   :  { %v2080_v22 = vpop.f32.mrf.mxu1 }
 0xc07   :  { %v2092_v59 = vsub.f32 %v1982_v26, %v2080_v22 }
 0xc08   :  { %v4625_v25 = vpop.f32.mrf.mxu1 }
 0xc0a   :  { %v2085_v28 = vpop.f32.mrf.mxu1 }
 0xc0b   :  { %v2093_v24 = vsub.f32 %v1983_v27, %v2085_v28  ;;  %v2198_v27 = vmul.f32 3.25, %v5832_v50 }
 0xc0c   :  { %v4628_v16 = vpop.f32.mrf.mxu1 }
 0xc0d   :  { %4630 = vmatpush3.msra.mxu0 %v2093_v24  ;;  %v2197_v16 = vmul.f32 3.25, %v5835_v46 }
 0xc0e   :  { %4631 = vmatprep.subr.mxu0 %v5089_v3 }
 0xc0f   :  { %4632 = vmatpush3.msra.mxu0 %v2092_v59 }
 0xc10   :  { %4633 = vmatprep.subr.mxu0 %v5089_v3 }
 0xc11   :  { %4634 = vmatpush3.msra.mxu0 %v2091_v1 }
 0xc12   :  { %4635 = vmatprep.subr.mxu0 %v5089_v3 }
 0xc13   :  { %4636 = vmatpush3.msra.mxu0 %v2090_v32  ;;  %v2195_v32 = vmul.f32 3.25, %v5845_v60 }
 0xc14   :  { %4637 = vmatprep.subr.mxu0 %v5089_v3 }
 0xc15   :  { %4638 = vmatpush3.msra.mxu0 %v2089_v34 }
 0xc16   :  { %4640 = vmatmul.mubr.msk.f32.vlgmr.msra.gmra.mxu0 %vm492_vm4, %v5875_v56  ;;  %4679 = vmatprep.subr.mxu0 %v5089_v3 }
 0xc17   :  { %4642 = vmatprep.mubr.msk.f32.mxu0 %vm5090_vm1, %v5089_v3 }
 0xc1a   :  { %4643 = vmatmul.mubr.msk.f32.gmra.mxu0 %vm492_vm4, %v5877_v62 }
 0xc1b   :  { %4645 = vmatprep.mubr.msk.f32.mxu0 %vm5090_vm1, %v5089_v3 }
 0xc1e   :  { %4646 = vmatmul.mubr.msk.f32.gmra.mxu0 %vm492_vm4, %v5879_v41 }
 0xc1f   :  { %4648 = vmatprep.mubr.msk.f32.mxu0 %vm5090_vm1, %v5089_v3 }
 0xc22   :  { %4649 = vmatmul.mubr.msk.f32.gmra.mxu0 %vm492_vm4, %v5881_v17 }
 0xc23   :  { %4651 = vmatprep.mubr.msk.f32.mxu0 %vm5090_vm1, %v5089_v3 }
 0xc26   :  { %4652 = vmatmul.mubr.msk.f32.gmra.mxu0 %vm492_vm4, %v5883_v7 }
 0xc27   :  { %4689 = vmatprep.mubr.msk.f32.mxu0 %vm5090_vm1, %v5089_v3 }
 0xcd6   :  { %v2165_v4 = vpop.f32.mrf.mxu0 }
 0xcd7   :  { %v2189_v17 = vsub.f32 %v2094_v47, %v2165_v4 }
 0xcd8   :  { %v4641_v35 = vpop.f32.mrf.mxu0 }
 0xcda   :  { %v2170_v37 = vpop.f32.mrf.mxu0 }
 0xcdb   :  { %v2190_v7 = vsub.f32 %v2095_v5, %v2170_v37 }
 0xcdc   :  { %v4644_v38 = vpop.f32.mrf.mxu0 }
 0xcde   :  { %v2175_v40 = vpop.f32.mrf.mxu0 }
 0xcdf   :  { %v2191_v49 = vsub.f32 %v2096_v43, %v2175_v40 }
 0xce0   :  { %v4647_v8 = vpop.f32.mrf.mxu0 }
 0xce2   :  { %v2180_v44 = vpop.f32.mrf.mxu0 }
 0xce3   :  { %v2192_v63 = vsub.f32 %v2097_v57, %v2180_v44 }
 0xce4   :  { %v4650_v45 = vpop.f32.mrf.mxu0 }
 0xce6   :  { %v2185_v55 = vpop.f32.mrf.mxu0 }
 0xce7   :  { %v2193_v10 = vsub.f32 %v2098_v52, %v2185_v55 }
 0xce8   :  { %v4653_v15 = vpop.f32.mrf.mxu0 }
 0xce9   :  { %4655 = vmatpush3.msra.mxu1 %v2193_v10 }
 0xcea   :  { %4656 = vmatprep.subr.mxu1 %v5089_v3 }
 0xceb   :  { %4657 = vmatpush3.msra.mxu1 %v2192_v63 }
 0xcec   :  { %4658 = vmatprep.subr.mxu1 %v5089_v3 }
 0xced   :  { %4659 = vmatpush3.msra.mxu1 %v2191_v49 }
 0xcee   :  { %4660 = vmatprep.subr.mxu1 %v5089_v3 }
 0xcef   :  { %4661 = vmatpush3.msra.mxu1 %v2190_v7 }
 0xcf0   :  { %4662 = vmatprep.subr.mxu1 %v5089_v3 }
 0xcf1   :  { %4663 = vmatpush3.msra.mxu1 %v2189_v17 }
 0xcf2   :  { %4665 = vmatmul.mubr.msk.f32.vlgmr.msra.gmra.mxu1 %vm492_vm4, %v5849_v14  ;;  %4704 = vmatprep.subr.mxu1 %v5089_v3 }
 0xcf3   :  { %4667 = vmatprep.mubr.msk.f32.mxu1 %vm5090_vm1, %v5089_v3 }
 0xcf6   :  { %4668 = vmatmul.mubr.msk.f32.gmra.mxu1 %vm492_vm4, %v5845_v60 }
 0xcf7   :  { %4670 = vmatprep.mubr.msk.f32.mxu1 %vm5090_vm1, %v5089_v3 }
 0xcfa   :  { %4671 = vmatmul.mubr.msk.f32.gmra.mxu1 %vm492_vm4, %v5840_v0 }
 0xcfb   :  { %4673 = vmatprep.mubr.msk.f32.mxu1 %vm5090_vm1, %v5089_v3 }
 0xcfe   :  { %4674 = vmatmul.mubr.msk.f32.gmra.mxu1 %vm492_vm4, %v5835_v46  ;;  %v2194_v46 = vmul.f32 3.25, %v5849_v14 }
 0xcff   :  { %4676 = vmatprep.mubr.msk.f32.mxu1 %vm5090_vm1, %v5089_v3 }
 0xd02   :  { %4677 = vmatmul.mubr.msk.f32.gmra.mxu1 %vm492_vm4, %v5832_v50 }
 0xd03   :  { %4714 = vmatprep.mubr.msk.f32.mxu1 %vm5090_vm1, %v5089_v3 }
 0xdb2   :  { %v2280_v56 = vpop.f32.mrf.mxu1 }
 0xdb3   :  { %v2304_v31 = vmul.f32 0.25, %v2280_v56 }
 0xdb4   :  { %v4666_v62 = vpop.f32.mrf.mxu1 }
 0xdb5   :  { %v5994_v0 = vsub.f32 %v2194_v46, %v2304_v31 }
 0xdb6   :  { %v2285_v41 = vpop.f32.mrf.mxu1 }
 0xdb7   :  { %v2305_v59 = vmul.f32 0.25, %v2285_v41 }
 0xdb8   :  { %v4669_v11 = vpop.f32.mrf.mxu1 }
 0xdb9   :  { %v5990_v34 = vsub.f32 %v2195_v32, %v2305_v59 }
 0xdba   :  { %v2290_v13 = vpop.f32.mrf.mxu1 }
 0xdbb   :  { %v2306_v24 = vmul.f32 0.25, %v2290_v13 }
 0xdbc   :  { %v4672_v54 = vpop.f32.mrf.mxu1 }
 0xdbd   :  { %v5985_v50 = vsub.f32 %v2196_v61, %v2306_v24 }
 0xdbe   :  { %v2295_v18 = vpop.f32.mrf.mxu1 }
 0xdbf   :  { %v2307_v25 = vmul.f32 0.25, %v2295_v18 }
 0xdc0   :  { %v4675_v20 = vpop.f32.mrf.mxu1 }
 0xdc1   :  { %v5980_v1 = vsub.f32 %v2197_v16, %v2307_v25 }
 0xdc2   :  { %v2300_v22 = vpop.f32.mrf.mxu1 }
 0xdc3   :  { %v2308_v28 = vmul.f32 0.25, %v2300_v22 }
 0xdc4   :  { %v4678_v26 = vpop.f32.mrf.mxu1 }
 0xdc5   :  { %v5977_v19 = vsub.f32 %v2198_v27, %v2308_v28 }
 0xdc7   :  { %4680 = vmatpush3.msra.mxu0 %v5977_v19 }
 0xdc8   :  { %4681 = vmatprep.subr.mxu0 %v5089_v3 }
 0xdc9   :  { %4682 = vmatpush3.msra.mxu0 %v5980_v1 }
 0xdca   :  { %4683 = vmatprep.subr.mxu0 %v5089_v3 }
 0xdcb   :  { %4684 = vmatpush3.msra.mxu0 %v5985_v50 }
 0xdcc   :  { %4685 = vmatprep.subr.mxu0 %v5089_v3 }
 0xdcd   :  { %4686 = vmatpush3.msra.mxu0 %v5990_v34 }
 0xdce   :  { %4687 = vmatprep.subr.mxu0 %v5089_v3 }
 0xdcf   :  { %4688 = vmatpush3.msra.mxu0 %v5994_v0 }
 0xdd0   :  { %4690 = vmatmul.mubr.msk.f32.vlgmr.msra.gmra.mxu0 %vm492_vm4, %v5570_v36  ;;  %4729 = vmatprep.subr.mxu0 %v5089_v3 }
 0xdd1   :  { %4692 = vmatprep.mubr.msk.f32.mxu0 %vm5090_vm1, %v5089_v3 }
 0xdd4   :  { %4693 = vmatmul.mubr.msk.f32.gmra.mxu0 %vm492_vm4, %v5572_v6 }
 0xdd5   :  { %4695 = vmatprep.mubr.msk.f32.mxu0 %vm5090_vm1, %v5089_v3 }
 0xdd8   :  { %4696 = vmatmul.mubr.msk.f32.gmra.mxu0 %vm492_vm4, %v5574_v39 }
 0xdd9   :  { %4698 = vmatprep.mubr.msk.f32.mxu0 %vm5090_vm1, %v5089_v3 }
 0xddc   :  { %4699 = vmatmul.mubr.msk.f32.gmra.mxu0 %vm492_vm4, %v5576_v12 }
 0xddd   :  { %4701 = vmatprep.mubr.msk.f32.mxu0 %vm5090_vm1, %v5089_v3 }
 0xde0   :  { %4702 = vmatmul.mubr.msk.f32.gmra.mxu0 %vm492_vm4, %v5580_v42 }
 0xde1   :  { %4739 = vmatprep.mubr.msk.f32.mxu0 %vm5090_vm1, %v5089_v3 }
 0xe90   :  { %v6020_v60 = vpop.f32.mrf.mxu0 }
 0xe91   :  { %v2404_v54 = vmul.f32 7.0, %v6020_v60 }
 0xe92   :  { %v4691_v14 = vpop.f32.mrf.mxu0 }
 0xe94   :  { %v6022_v4 = vpop.f32.mrf.mxu0 }
 0xe95   :  { %v2405_v11 = vmul.f32 7.0, %v6022_v4 }
 0xe96   :  { %v4694_v35 = vpop.f32.mrf.mxu0 }
 0xe98   :  { %v6024_v37 = vpop.f32.mrf.mxu0 }
 0xe99   :  { %v2406_v62 = vmul.f32 7.0, %v6024_v37  ;;  %v2521_v35 = vmul.f32 15.0, %v6024_v37 }
 0xe9a   :  { %v4697_v38 = vpop.f32.mrf.mxu0 }
 0xe9c   :  { %v6026_v40 = vpop.f32.mrf.mxu0 }
 0xe9d   :  { %v2407_v7 = vmul.f32 7.0, %v6026_v40  ;;  %v2522_v32 = vmul.f32 15.0, %v6026_v40 }
 0xe9e   :  { %v4700_v8 = vpop.f32.mrf.mxu0 }
 0xe9f   :  { %v2520_v8 = vmul.f32 15.0, %v6022_v4 }
 0xea0   :  { %v6028_v44 = vpop.f32.mrf.mxu0 }
 0xea1   :  { %4705 = vmatpush3.msra.mxu1 %v6028_v44  ;;  %v2408_v49 = vmul.f32 7.0, %v6028_v44  ;;  %v2523_v61 = vmul.f32 15.0, %v6028_v44 }
 0xea2   :  { %v4703_v45 = vpop.f32.mrf.mxu0  ;;  %4706 = vmatprep.subr.mxu1 %v5089_v3 }
 0xea3   :  { %4707 = vmatpush3.msra.mxu1 %v6026_v40 }
 0xea4   :  { %4708 = vmatprep.subr.mxu1 %v5089_v3 }
 0xea5   :  { %4709 = vmatpush3.msra.mxu1 %v6024_v37 }
 0xea6   :  { %4710 = vmatprep.subr.mxu1 %v5089_v3 }
 0xea7   :  { %4711 = vmatpush3.msra.mxu1 %v6022_v4 }
 0xea8   :  { %4712 = vmatprep.subr.mxu1 %v5089_v3 }
 0xea9   :  { %4713 = vmatpush3.msra.mxu1 %v6020_v60 }
 0xeaa   :  { %4715 = vmatmul.mubr.msk.f32.vlgmr.msra.gmra.mxu1 %vm492_vm4, %v6020_v60  ;;  %4754 = vmatprep.subr.mxu1 %v5089_v3 }
 0xeab   :  { %4717 = vmatprep.mubr.msk.f32.mxu1 %vm5090_vm1, %v5089_v3 }
 0xeae   :  { %4718 = vmatmul.mubr.msk.f32.gmra.mxu1 %vm492_vm4, %v6022_v4 }
 0xeaf   :  { %4720 = vmatprep.mubr.msk.f32.mxu1 %vm5090_vm1, %v5089_v3 }
 0xeb2   :  { %4721 = vmatmul.mubr.msk.f32.gmra.mxu1 %vm492_vm4, %v6024_v37 }
 0xeb3   :  { %4723 = vmatprep.mubr.msk.f32.mxu1 %vm5090_vm1, %v5089_v3 }
 0xeb6   :  { %4724 = vmatmul.mubr.msk.f32.gmra.mxu1 %vm492_vm4, %v6026_v40 }
 0xeb7   :  { %4726 = vmatprep.mubr.msk.f32.mxu1 %vm5090_vm1, %v5089_v3 }
 0xeba   :  { %4727 = vmatmul.mubr.msk.f32.gmra.mxu1 %vm492_vm4, %v6028_v44 }
 0xebb   :  { %4764 = vmatprep.mubr.msk.f32.mxu1 %vm5090_vm1, %v5089_v3 }
 0xf6a   :  { %v2490_v52 = vpop.f32.mrf.mxu1 }
 0xf6b   :  { %v2514_v20 = vsub.f32 %v2404_v54, %v2490_v52  ;;  %v2519_v52 = vmul.f32 15.0, %v6020_v60 }
 0xf6c   :  { %v4716_v55 = vpop.f32.mrf.mxu1 }
 0xf6e   :  { %v2495_v57 = vpop.f32.mrf.mxu1 }
 0xf6f   :  { %v2515_v18 = vsub.f32 %v2405_v11, %v2495_v57  ;;  %v2621_v11 = vmul.f32 3.25, %v5985_v50 }
 0xf70   :  { %v4719_v10 = vpop.f32.mrf.mxu1 }
 0xf72   :  { %v2500_v15 = vpop.f32.mrf.mxu1 }
 0xf73   :  { %v2516_v13 = vsub.f32 %v2406_v62, %v2500_v15 }
 0xf74   :  { %v4722_v43 = vpop.f32.mrf.mxu1 }
 0xf76   :  { %v2505_v63 = vpop.f32.mrf.mxu1 }
 0xf77   :  { %v2517_v41 = vsub.f32 %v2407_v7, %v2505_v63 }
 0xf78   :  { %v4725_v5 = vpop.f32.mrf.mxu1 }
 0xf7a   :  { %v2510_v47 = vpop.f32.mrf.mxu1 }
 0xf7b   :  { %v2518_v17 = vsub.f32 %v2408_v49, %v2510_v47  ;;  %v2623_v49 = vmul.f32 3.25, %v5977_v19 }
 0xf7c   :  { %v4728_v56 = vpop.f32.mrf.mxu1 }
 0xf7d   :  { %4730 = vmatpush3.msra.mxu0 %v2518_v17  ;;  %v2622_v56 = vmul.f32 3.25, %v5980_v1 }
 0xf7e   :  { %4731 = vmatprep.subr.mxu0 %v5089_v3 }
 0xf7f   :  { %4732 = vmatpush3.msra.mxu0 %v2517_v41 }
 0xf80   :  { %4733 = vmatprep.subr.mxu0 %v5089_v3 }
 0xf81   :  { %4734 = vmatpush3.msra.mxu0 %v2516_v13 }
 0xf82   :  { %4735 = vmatprep.subr.mxu0 %v5089_v3 }
 0xf83   :  { %4736 = vmatpush3.msra.mxu0 %v2515_v18  ;;  %v2620_v18 = vmul.f32 3.25, %v5990_v34 }
 0xf84   :  { %4737 = vmatprep.subr.mxu0 %v5089_v3 }
 0xf85   :  { %4738 = vmatpush3.msra.mxu0 %v2514_v20 }
 0xf86   :  { %4740 = vmatmul.mubr.msk.f32.vlgmr.msra.gmra.mxu0 %vm492_vm4, %v6020_v60  ;;  %4779 = vmatprep.subr.mxu0 %v5089_v3 }
 0xf87   :  { %4742 = vmatprep.mubr.msk.f32.mxu0 %vm5090_vm1, %v5089_v3 }
 0xf8a   :  { %4743 = vmatmul.mubr.msk.f32.gmra.mxu0 %vm492_vm4, %v6022_v4 }
 0xf8b   :  { %4745 = vmatprep.mubr.msk.f32.mxu0 %vm5090_vm1, %v5089_v3 }
 0xf8e   :  { %4746 = vmatmul.mubr.msk.f32.gmra.mxu0 %vm492_vm4, %v6024_v37 }
 0xf8f   :  { %4748 = vmatprep.mubr.msk.f32.mxu0 %vm5090_vm1, %v5089_v3 }
 0xf92   :  { %4749 = vmatmul.mubr.msk.f32.gmra.mxu0 %vm492_vm4, %v6026_v40 }
 0xf93   :  { %4751 = vmatprep.mubr.msk.f32.mxu0 %vm5090_vm1, %v5089_v3 }
 0xf96   :  { %4752 = vmatmul.mubr.msk.f32.gmra.mxu0 %vm492_vm4, %v6028_v44 }
 0xf97   :  { %4789 = vmatprep.mubr.msk.f32.mxu0 %vm5090_vm1, %v5089_v3 }
0x1046   :  { %v2590_v22 = vpop.f32.mrf.mxu0 }
0x1047   :  { %v2614_v40 = vsub.f32 %v2519_v52, %v2590_v22 }
0x1048   :  { %v4741_v25 = vpop.f32.mrf.mxu0 }
0x104a   :  { %v2595_v27 = vpop.f32.mrf.mxu0 }
0x104b   :  { %v2615_v44 = vsub.f32 %v2520_v8, %v2595_v27 }
0x104c   :  { %v4744_v28 = vpop.f32.mrf.mxu0 }
0x104e   :  { %v2600_v26 = vpop.f32.mrf.mxu0 }
0x104f   :  { %v2616_v45 = vsub.f32 %v2521_v35, %v2600_v26 }
0x1050   :  { %v4747_v24 = vpop.f32.mrf.mxu0 }
0x1052   :  { %v2605_v16 = vpop.f32.mrf.mxu0 }
0x1053   :  { %v2617_v38 = vsub.f32 %v2522_v32, %v2605_v16 }
0x1054   :  { %v4750_v59 = vpop.f32.mrf.mxu0 }
0x1056   :  { %v2610_v31 = vpop.f32.mrf.mxu0 }
0x1057   :  { %v2618_v46 = vsub.f32 %v2523_v61, %v2610_v31 }
0x1058   :  { %v4753_v14 = vpop.f32.mrf.mxu0 }
0x1059   :  { %4755 = vmatpush3.msra.mxu1 %v2618_v46 }
0x105a   :  { %4756 = vmatprep.subr.mxu1 %v5089_v3 }
0x105b   :  { %4757 = vmatpush3.msra.mxu1 %v2617_v38 }
0x105c   :  { %4758 = vmatprep.subr.mxu1 %v5089_v3 }
0x105d   :  { %4759 = vmatpush3.msra.mxu1 %v2616_v45 }
0x105e   :  { %4760 = vmatprep.subr.mxu1 %v5089_v3 }
0x105f   :  { %4761 = vmatpush3.msra.mxu1 %v2615_v44 }
0x1060   :  { %4762 = vmatprep.subr.mxu1 %v5089_v3 }
0x1061   :  { %4763 = vmatpush3.msra.mxu1 %v2614_v40 }
0x1062   :  { %4765 = vmatmul.mubr.msk.f32.vlgmr.msra.gmra.mxu1 %vm492_vm4, %v5994_v0  ;;  %4804 = vmatprep.subr.mxu1 %v5089_v3 }
0x1063   :  { %4767 = vmatprep.mubr.msk.f32.mxu1 %vm5090_vm1, %v5089_v3 }
0x1066   :  { %4768 = vmatmul.mubr.msk.f32.gmra.mxu1 %vm492_vm4, %v5990_v34 }
0x1067   :  { %4770 = vmatprep.mubr.msk.f32.mxu1 %vm5090_vm1, %v5089_v3 }
0x106a   :  { %4771 = vmatmul.mubr.msk.f32.gmra.mxu1 %vm492_vm4, %v5985_v50 }
0x106b   :  { %4773 = vmatprep.mubr.msk.f32.mxu1 %vm5090_vm1, %v5089_v3 }
0x106e   :  { %4774 = vmatmul.mubr.msk.f32.gmra.mxu1 %vm492_vm4, %v5980_v1  ;;  %v2619_v1 = vmul.f32 3.25, %v5994_v0 }
0x106f   :  { %4776 = vmatprep.mubr.msk.f32.mxu1 %vm5090_vm1, %v5089_v3 }
0x1072   :  { %4777 = vmatmul.mubr.msk.f32.gmra.mxu1 %vm492_vm4, %v5977_v19 }
0x1073   :  { %4814 = vmatprep.mubr.msk.f32.mxu1 %vm5090_vm1, %v5089_v3 }
0x1122   :  { %v2705_v60 = vpop.f32.mrf.mxu1 }
0x1123   :  { %v2729_v54 = vmul.f32 0.25, %v2705_v60 }
0x1124   :  { %v4766_v4 = vpop.f32.mrf.mxu1 }
0x1125   :  { %v6139_v50 = vsub.f32 %v2619_v1, %v2729_v54 }
0x1126   :  { %v2710_v37 = vpop.f32.mrf.mxu1 }
0x1127   :  { %v2730_v41 = vmul.f32 0.25, %v2710_v37 }
0x1128   :  { %v4769_v55 = vpop.f32.mrf.mxu1 }
0x1129   :  { %v6135_v20 = vsub.f32 %v2620_v18, %v2730_v41 }
0x112a   :  { %v2715_v57 = vpop.f32.mrf.mxu1 }
0x112b   :  { %v2731_v17 = vmul.f32 0.25, %v2715_v57 }
0x112c   :  { %v4772_v10 = vpop.f32.mrf.mxu1 }
0x112d   :  { %v6130_v19 = vsub.f32 %v2621_v11, %v2731_v17 }
0x112e   :  { %v2720_v15 = vpop.f32.mrf.mxu1 }
0x112f   :  { %v2732_v5 = vmul.f32 0.25, %v2720_v15 }
0x1130   :  { %v4775_v43 = vpop.f32.mrf.mxu1 }
0x1131   :  { %v6125_v13 = vsub.f32 %v2622_v56, %v2732_v5 }
0x1132   :  { %v2725_v63 = vpop.f32.mrf.mxu1 }
0x1133   :  { %v2733_v47 = vmul.f32 0.25, %v2725_v63 }
0x1134   :  { %v4778_v7 = vpop.f32.mrf.mxu1 }
0x1135   :  { %v6122_v62 = vsub.f32 %v2623_v49, %v2733_v47 }
0x1137   :  { %4780 = vmatpush3.msra.mxu0 %v6122_v62 }
0x1138   :  { %4781 = vmatprep.subr.mxu0 %v5089_v3 }
0x1139   :  { %4782 = vmatpush3.msra.mxu0 %v6125_v13 }
0x113a   :  { %4783 = vmatprep.subr.mxu0 %v5089_v3 }
0x113b   :  { %4784 = vmatpush3.msra.mxu0 %v6130_v19 }
0x113c   :  { %4785 = vmatprep.subr.mxu0 %v5089_v3 }
0x113d   :  { %4786 = vmatpush3.msra.mxu0 %v6135_v20 }
0x113e   :  { %4787 = vmatprep.subr.mxu0 %v5089_v3 }
0x113f   :  { %4788 = vmatpush3.msra.mxu0 %v6139_v50 }
0x1140   :  { %4790 = vmatmul.mubr.msk.f32.vlgmr.msra.gmra.mxu0 %vm492_vm4, %v5570_v36  ;;  %4829 = vmatprep.subr.mxu0 %v5089_v3 }
0x1141   :  { %4792 = vmatprep.mubr.msk.f32.mxu0 %vm5090_vm1, %v5089_v3 }
0x1144   :  { %4793 = vmatmul.mubr.msk.f32.gmra.mxu0 %vm492_vm4, %v5572_v6 }
0x1145   :  { %4795 = vmatprep.mubr.msk.f32.mxu0 %vm5090_vm1, %v5089_v3 }
0x1148   :  { %4796 = vmatmul.mubr.msk.f32.gmra.mxu0 %vm492_vm4, %v5574_v39 }
0x1149   :  { %4798 = vmatprep.mubr.msk.f32.mxu0 %vm5090_vm1, %v5089_v3 }
0x114c   :  { %4799 = vmatmul.mubr.msk.f32.gmra.mxu0 %vm492_vm4, %v5576_v12 }
0x114d   :  { %4801 = vmatprep.mubr.msk.f32.mxu0 %vm5090_vm1, %v5089_v3 }
0x1150   :  { %4802 = vmatmul.mubr.msk.f32.gmra.mxu0 %vm492_vm4, %v5580_v42 }
0x1151   :  { %4839 = vmatprep.mubr.msk.f32.mxu0 %vm5090_vm1, %v5089_v3 }
0x1200   :  { %v6165_v34 = vpop.f32.mrf.mxu0 }
0x1201   :  { %v2829_v10 = vmul.f32 7.0, %v6165_v34 }
0x1202   :  { %v4791_v0 = vpop.f32.mrf.mxu0 }
0x1204   :  { %v6167_v22 = vpop.f32.mrf.mxu0 }
0x1205   :  { %v2830_v55 = vmul.f32 7.0, %v6167_v22 }
0x1206   :  { %v4794_v25 = vpop.f32.mrf.mxu0 }
0x1208   :  { %v6169_v27 = vpop.f32.mrf.mxu0 }
0x1209   :  { %v2831_v4 = vmul.f32 7.0, %v6169_v27  ;;  %v2946_v25 = vmul.f32 15.0, %v6169_v27 }
0x120a   :  { %v4797_v28 = vpop.f32.mrf.mxu0 }
0x120c   :  { %v6171_v26 = vpop.f32.mrf.mxu0 }
0x120d   :  { %v2832_v44 = vmul.f32 7.0, %v6171_v26  ;;  %v2947_v18 = vmul.f32 15.0, %v6171_v26 }
0x120e   :  { %v4800_v24 = vpop.f32.mrf.mxu0 }
0x120f   :  { %v2945_v24 = vmul.f32 15.0, %v6167_v22 }
0x1210   :  { %v6173_v16 = vpop.f32.mrf.mxu0 }
0x1211   :  { %4805 = vmatpush3.msra.mxu1 %v6173_v16  ;;  %v2833_v45 = vmul.f32 7.0, %v6173_v16  ;;  %v2948_v11 = vmul.f32 15.0, %v6173_v16 }
0x1212   :  { %v4803_v59 = vpop.f32.mrf.mxu0  ;;  %4806 = vmatprep.subr.mxu1 %v5089_v3 }
0x1213   :  { %4807 = vmatpush3.msra.mxu1 %v6171_v26 }
0x1214   :  { %4808 = vmatprep.subr.mxu1 %v5089_v3 }
0x1215   :  { %4809 = vmatpush3.msra.mxu1 %v6169_v27 }
0x1216   :  { %4810 = vmatprep.subr.mxu1 %v5089_v3 }
0x1217   :  { %4811 = vmatpush3.msra.mxu1 %v6167_v22 }
0x1218   :  { %4812 = vmatprep.subr.mxu1 %v5089_v3 }
0x1219   :  { %4813 = vmatpush3.msra.mxu1 %v6165_v34 }
0x121a   :  { %4815 = vmatmul.mubr.msk.f32.vlgmr.msra.gmra.mxu1 %vm492_vm4, %v6165_v34  ;;  %4854 = vmatprep.subr.mxu1 %v5089_v3 }
0x121b   :  { %4817 = vmatprep.mubr.msk.f32.mxu1 %vm5090_vm1, %v5089_v3 }
0x121e   :  { %4818 = vmatmul.mubr.msk.f32.gmra.mxu1 %vm492_vm4, %v6167_v22 }
0x121f   :  { %4820 = vmatprep.mubr.msk.f32.mxu1 %vm5090_vm1, %v5089_v3 }
0x1222   :  { %4821 = vmatmul.mubr.msk.f32.gmra.mxu1 %vm492_vm4, %v6169_v27 }
0x1223   :  { %4823 = vmatprep.mubr.msk.f32.mxu1 %vm5090_vm1, %v5089_v3 }
0x1226   :  { %4824 = vmatmul.mubr.msk.f32.gmra.mxu1 %vm492_vm4, %v6171_v26 }
0x1227   :  { %4826 = vmatprep.mubr.msk.f32.mxu1 %vm5090_vm1, %v5089_v3 }
0x122a   :  { %4827 = vmatmul.mubr.msk.f32.gmra.mxu1 %vm492_vm4, %v6173_v16 }
0x122b   :  { %4864 = vmatprep.mubr.msk.f32.mxu1 %vm5090_vm1, %v5089_v3 }
0x12da   :  { %v2915_v61 = vpop.f32.mrf.mxu1 }
0x12db   :  { %v2939_v43 = vsub.f32 %v2829_v10, %v2915_v61  ;;  %v2944_v61 = vmul.f32 15.0, %v6165_v34 }
0x12dc   :  { %v4816_v31 = vpop.f32.mrf.mxu1 }
0x12de   :  { %v2920_v32 = vpop.f32.mrf.mxu1 }
0x12df   :  { %v2940_v15 = vsub.f32 %v2830_v55, %v2920_v32  ;;  %v3046_v55 = vmul.f32 3.25, %v6130_v19 }
0x12e0   :  { %v4819_v46 = vpop.f32.mrf.mxu1 }
0x12e2   :  { %v2925_v14 = vpop.f32.mrf.mxu1 }
0x12e3   :  { %v2941_v57 = vsub.f32 %v2831_v4, %v2925_v14 }
0x12e4   :  { %v4822_v35 = vpop.f32.mrf.mxu1 }
0x12e6   :  { %v2930_v38 = vpop.f32.mrf.mxu1 }
0x12e7   :  { %v2942_v37 = vsub.f32 %v2832_v44, %v2930_v38 }
0x12e8   :  { %v4825_v8 = vpop.f32.mrf.mxu1 }
0x12ea   :  { %v2935_v52 = vpop.f32.mrf.mxu1 }
0x12eb   :  { %v2943_v40 = vsub.f32 %v2833_v45, %v2935_v52  ;;  %v3048_v45 = vmul.f32 3.25, %v6122_v62 }
0x12ec   :  { %v4828_v60 = vpop.f32.mrf.mxu1 }
0x12ed   :  { %4830 = vmatpush3.msra.mxu0 %v2943_v40  ;;  %v3047_v60 = vmul.f32 3.25, %v6125_v13 }
0x12ee   :  { %4831 = vmatprep.subr.mxu0 %v5089_v3 }
0x12ef   :  { %4832 = vmatpush3.msra.mxu0 %v2942_v37 }
0x12f0   :  { %4833 = vmatprep.subr.mxu0 %v5089_v3 }
0x12f1   :  { %4834 = vmatpush3.msra.mxu0 %v2941_v57 }
0x12f2   :  { %4835 = vmatprep.subr.mxu0 %v5089_v3 }
0x12f3   :  { %4836 = vmatpush3.msra.mxu0 %v2940_v15  ;;  %v3045_v15 = vmul.f32 3.25, %v6135_v20 }
0x12f4   :  { %4837 = vmatprep.subr.mxu0 %v5089_v3 }
0x12f5   :  { %4838 = vmatpush3.msra.mxu0 %v2939_v43 }
0x12f6   :  { %4840 = vmatmul.mubr.msk.f32.vlgmr.msra.gmra.mxu0 %vm492_vm4, %v6165_v34  ;;  %4879 = vmatprep.subr.mxu0 %v5089_v3 }
0x12f7   :  { %4842 = vmatprep.mubr.msk.f32.mxu0 %vm5090_vm1, %v5089_v3 }
0x12fa   :  { %4843 = vmatmul.mubr.msk.f32.gmra.mxu0 %vm492_vm4, %v6167_v22 }
0x12fb   :  { %4845 = vmatprep.mubr.msk.f32.mxu0 %vm5090_vm1, %v5089_v3 }
0x12fe   :  { %4846 = vmatmul.mubr.msk.f32.gmra.mxu0 %vm492_vm4, %v6169_v27 }
0x12ff   :  { %4848 = vmatprep.mubr.msk.f32.mxu0 %vm5090_vm1, %v5089_v3 }
0x1302   :  { %4849 = vmatmul.mubr.msk.f32.gmra.mxu0 %vm492_vm4, %v6171_v26 }
0x1303   :  { %4851 = vmatprep.mubr.msk.f32.mxu0 %vm5090_vm1, %v5089_v3 }
0x1306   :  { %4852 = vmatmul.mubr.msk.f32.gmra.mxu0 %vm492_vm4, %v6173_v16 }
0x1307   :  { %4889 = vmatprep.mubr.msk.f32.mxu0 %vm5090_vm1, %v5089_v3 }
0x13b6   :  { %v3015_v63 = vpop.f32.mrf.mxu0 }
0x13b7   :  { %v3039_v26 = vsub.f32 %v2944_v61, %v3015_v63 }
0x13b8   :  { %v4841_v5 = vpop.f32.mrf.mxu0 }
0x13ba   :  { %v3020_v49 = vpop.f32.mrf.mxu0 }
0x13bb   :  { %v3040_v16 = vsub.f32 %v2945_v24, %v3020_v49 }
0x13bc   :  { %v4844_v47 = vpop.f32.mrf.mxu0 }
0x13be   :  { %v3025_v7 = vpop.f32.mrf.mxu0 }
0x13bf   :  { %v3041_v59 = vsub.f32 %v2946_v25, %v3025_v7 }
0x13c0   :  { %v4847_v17 = vpop.f32.mrf.mxu0 }
0x13c2   :  { %v3030_v56 = vpop.f32.mrf.mxu0 }
0x13c3   :  { %v3042_v28 = vsub.f32 %v2947_v18, %v3030_v56 }
0x13c4   :  { %v4850_v41 = vpop.f32.mrf.mxu0 }
0x13c6   :  { %v3035_v54 = vpop.f32.mrf.mxu0 }
0x13c7   :  { %v3043_v1 = vsub.f32 %v2948_v11, %v3035_v54 }
0x13c8   :  { %v4853_v0 = vpop.f32.mrf.mxu0 }
0x13c9   :  { %4855 = vmatpush3.msra.mxu1 %v3043_v1 }
0x13ca   :  { %4856 = vmatprep.subr.mxu1 %v5089_v3 }
0x13cb   :  { %4857 = vmatpush3.msra.mxu1 %v3042_v28 }
0x13cc   :  { %4858 = vmatprep.subr.mxu1 %v5089_v3 }
0x13cd   :  { %4859 = vmatpush3.msra.mxu1 %v3041_v59 }
0x13ce   :  { %4860 = vmatprep.subr.mxu1 %v5089_v3 }
0x13cf   :  { %4861 = vmatpush3.msra.mxu1 %v3040_v16 }
0x13d0   :  { %4862 = vmatprep.subr.mxu1 %v5089_v3 }
0x13d1   :  { %4863 = vmatpush3.msra.mxu1 %v3039_v26 }
0x13d2   :  { %4865 = vmatmul.mubr.msk.f32.vlgmr.msra.gmra.mxu1 %vm492_vm4, %v6139_v50  ;;  %4904 = vmatprep.subr.mxu1 %v5089_v3 }
0x13d3   :  { %4867 = vmatprep.mubr.msk.f32.mxu1 %vm5090_vm1, %v5089_v3 }
0x13d6   :  { %4868 = vmatmul.mubr.msk.f32.gmra.mxu1 %vm492_vm4, %v6135_v20 }
0x13d7   :  { %4870 = vmatprep.mubr.msk.f32.mxu1 %vm5090_vm1, %v5089_v3 }
0x13da   :  { %4871 = vmatmul.mubr.msk.f32.gmra.mxu1 %vm492_vm4, %v6130_v19 }
0x13db   :  { %4873 = vmatprep.mubr.msk.f32.mxu1 %vm5090_vm1, %v5089_v3 }
0x13de   :  { %4874 = vmatmul.mubr.msk.f32.gmra.mxu1 %vm492_vm4, %v6125_v13  ;;  %v3044_v13 = vmul.f32 3.25, %v6139_v50 }
0x13df   :  { %4876 = vmatprep.mubr.msk.f32.mxu1 %vm5090_vm1, %v5089_v3 }
0x13e2   :  { %4877 = vmatmul.mubr.msk.f32.gmra.mxu1 %vm492_vm4, %v6122_v62 }
0x13e3   :  { %4914 = vmatprep.mubr.msk.f32.mxu1 %vm5090_vm1, %v5089_v3 }
0x1492   :  { %v3130_v34 = vpop.f32.mrf.mxu1 }
0x1493   :  { %v3154_v10 = vmul.f32 0.25, %v3130_v34 }
0x1494   :  { %v4866_v22 = vpop.f32.mrf.mxu1 }
0x1495   :  { %v6284_v19 = vsub.f32 %v3044_v13, %v3154_v10 }
0x1496   :  { %v3135_v27 = vpop.f32.mrf.mxu1 }
0x1497   :  { %v3155_v37 = vmul.f32 0.25, %v3135_v27 }
0x1498   :  { %v4869_v31 = vpop.f32.mrf.mxu1 }
0x1499   :  { %v6280_v43 = vsub.f32 %v3045_v15, %v3155_v37 }
0x149a   :  { %v3140_v32 = vpop.f32.mrf.mxu1 }
0x149b   :  { %v3156_v40 = vmul.f32 0.25, %v3140_v32 }
0x149c   :  { %v4872_v46 = vpop.f32.mrf.mxu1 }
0x149d   :  { %v6275_v62 = vsub.f32 %v3046_v55, %v3156_v40 }
0x149e   :  { %v3145_v14 = vpop.f32.mrf.mxu1 }
0x149f   :  { %v3157_v8 = vmul.f32 0.25, %v3145_v14 }
0x14a0   :  { %v4875_v35 = vpop.f32.mrf.mxu1 }
0x14a1   :  { %v6270_v57 = vsub.f32 %v3047_v60, %v3157_v8 }
0x14a2   :  { %v3150_v38 = vpop.f32.mrf.mxu1 }
0x14a3   :  { %v3158_v52 = vmul.f32 0.25, %v3150_v38 }
0x14a4   :  { %v4878_v44 = vpop.f32.mrf.mxu1 }
0x14a5   :  { %v6267_v4 = vsub.f32 %v3048_v45, %v3158_v52 }
0x14a7   :  { %4880 = vmatpush3.msra.mxu0 %v6267_v4 }
0x14a8   :  { %4881 = vmatprep.subr.mxu0 %v5089_v3 }
0x14a9   :  { %4882 = vmatpush3.msra.mxu0 %v6270_v57 }
0x14aa   :  { %4883 = vmatprep.subr.mxu0 %v5089_v3 }
0x14ab   :  { %4884 = vmatpush3.msra.mxu0 %v6275_v62 }
0x14ac   :  { %4885 = vmatprep.subr.mxu0 %v5089_v3 }
0x14ad   :  { %4886 = vmatpush3.msra.mxu0 %v6280_v43 }
0x14ae   :  { %4887 = vmatprep.subr.mxu0 %v5089_v3 }
0x14af   :  { %4888 = vmatpush3.msra.mxu0 %v6284_v19 }
0x14b0   :  { %4890 = vmatmul.mubr.msk.f32.vlgmr.msra.gmra.mxu0 %vm492_vm4, %v5570_v36  ;;  %4929 = vmatprep.subr.mxu0 %v5089_v3 }
0x14b1   :  { %4892 = vmatprep.mubr.msk.f32.mxu0 %vm5090_vm1, %v5089_v3 }
0x14b4   :  { %4893 = vmatmul.mubr.msk.f32.gmra.mxu0 %vm492_vm4, %v5572_v6 }
0x14b5   :  { %4895 = vmatprep.mubr.msk.f32.mxu0 %vm5090_vm1, %v5089_v3 }
0x14b8   :  { %4896 = vmatmul.mubr.msk.f32.gmra.mxu0 %vm492_vm4, %v5574_v39 }
0x14b9   :  { %4898 = vmatprep.mubr.msk.f32.mxu0 %vm5090_vm1, %v5089_v3 }
0x14bc   :  { %4899 = vmatmul.mubr.msk.f32.gmra.mxu0 %vm492_vm4, %v5576_v12 }
0x14bd   :  { %4901 = vmatprep.mubr.msk.f32.mxu0 %vm5090_vm1, %v5089_v3 }
0x14c0   :  { %4902 = vmatmul.mubr.msk.f32.gmra.mxu0 %vm492_vm4, %v5580_v42 }
0x14c1   :  { %4939 = vmatprep.mubr.msk.f32.mxu0 %vm5090_vm1, %v5089_v3 }
0x1570   :  { %v6310_v36 = vpop.f32.mrf.mxu0 }
0x1571   :  { %v3254_v34 = vmul.f32 7.0, %v6310_v36 }
0x1572   :  { %v4891_v6 = vpop.f32.mrf.mxu0 }
0x1573   :  { %v3369_v6 = vmul.f32 15.0, %v6310_v36 }
0x1574   :  { %v6312_v20 = vpop.f32.mrf.mxu0 }
0x1575   :  { %v3255_v16 = vmul.f32 7.0, %v6312_v20  ;;  %v3370_v15 = vmul.f32 15.0, %v6312_v20 }
0x1576   :  { %v4894_v39 = vpop.f32.mrf.mxu0 }
0x1578   :  { %v6314_v50 = vpop.f32.mrf.mxu0 }
0x1579   :  { %v3256_v59 = vmul.f32 7.0, %v6314_v50  ;;  %v3371_v55 = vmul.f32 15.0, %v6314_v50 }
0x157a   :  { %v4897_v63 = vpop.f32.mrf.mxu0 }
0x157c   :  { %v6316_v5 = vpop.f32.mrf.mxu0 }
0x157d   :  { %v3257_v25 = vmul.f32 7.0, %v6316_v5  ;;  %v3372_v40 = vmul.f32 15.0, %v6316_v5 }
0x157e   :  { %v4900_v12 = vpop.f32.mrf.mxu0 }
0x1580   :  { %v6318_v49 = vpop.f32.mrf.mxu0 }
0x1581   :  { %4905 = vmatpush3.msra.mxu1 %v6318_v49  ;;  %v3258_v1 = vmul.f32 7.0, %v6318_v49  ;;  %v3373_v52 = vmul.f32 15.0, %v6318_v49 }
0x1582   :  { %v4903_v42 = vpop.f32.mrf.mxu0  ;;  %4906 = vmatprep.subr.mxu1 %v5089_v3 }
0x1583   :  { %4907 = vmatpush3.msra.mxu1 %v6316_v5 }
0x1584   :  { %4908 = vmatprep.subr.mxu1 %v5089_v3 }
0x1585   :  { %4909 = vmatpush3.msra.mxu1 %v6314_v50 }
0x1586   :  { %4910 = vmatprep.subr.mxu1 %v5089_v3 }
0x1587   :  { %4911 = vmatpush3.msra.mxu1 %v6312_v20 }
0x1588   :  { %4912 = vmatprep.subr.mxu1 %v5089_v3 }
0x1589   :  { %4913 = vmatpush3.msra.mxu1 %v6310_v36 }
0x158a   :  { %4915 = vmatmul.mubr.msk.f32.vlgmr.msra.gmra.mxu1 %vm492_vm4, %v6310_v36  ;;  %4954 = vmatprep.subr.mxu1 %v5089_v3 }
0x158b   :  { %4917 = vmatprep.mubr.msk.f32.mxu1 %vm5090_vm1, %v5089_v3 }
0x158e   :  { %4918 = vmatmul.mubr.msk.f32.gmra.mxu1 %vm492_vm4, %v6312_v20 }
0x158f   :  { %4920 = vmatprep.mubr.msk.f32.mxu1 %vm5090_vm1, %v5089_v3 }
0x1592   :  { %4921 = vmatmul.mubr.msk.f32.gmra.mxu1 %vm492_vm4, %v6314_v50 }
0x1593   :  { %4923 = vmatprep.mubr.msk.f32.mxu1 %vm5090_vm1, %v5089_v3 }
0x1596   :  { %4924 = vmatmul.mubr.msk.f32.gmra.mxu1 %vm492_vm4, %v6316_v5 }
0x1597   :  { %4926 = vmatprep.mubr.msk.f32.mxu1 %vm5090_vm1, %v5089_v3 }
0x159a   :  { %4927 = vmatmul.mubr.msk.f32.gmra.mxu1 %vm492_vm4, %v6318_v49 }
0x159b   :  { %4964 = vmatprep.mubr.msk.f32.mxu1 %vm5090_vm1, %v5089_v3 }
0x164a   :  { %v3340_v47 = vpop.f32.mrf.mxu1 }
0x164b   :  { %v3364_v27 = vsub.f32 %v3254_v34, %v3340_v47 }
0x164c   :  { %v4916_v7 = vpop.f32.mrf.mxu1 }
0x164e   :  { %v3345_v17 = vpop.f32.mrf.mxu1 }
0x164f   :  { %v3365_v22 = vsub.f32 %v3255_v16, %v3345_v17  ;;  %v3471_v16 = vmul.f32 3.25, %v6275_v62 }
0x1650   :  { %v4919_v56 = vpop.f32.mrf.mxu1 }
0x1652   :  { %v3350_v41 = vpop.f32.mrf.mxu1 }
0x1653   :  { %v3366_v26 = vsub.f32 %v3256_v59, %v3350_v41 }
0x1654   :  { %v4922_v11 = vpop.f32.mrf.mxu1 }
0x1656   :  { %v3355_v54 = vpop.f32.mrf.mxu1 }
0x1657   :  { %v3367_v61 = vsub.f32 %v3257_v25, %v3355_v54 }
0x1658   :  { %v4925_v18 = vpop.f32.mrf.mxu1 }
0x165a   :  { %v3360_v0 = vpop.f32.mrf.mxu1 }
0x165b   :  { %v3368_v28 = vsub.f32 %v3258_v1, %v3360_v0  ;;  %v3473_v1 = vmul.f32 3.25, %v6267_v4 }
0x165c   :  { %v4928_v24 = vpop.f32.mrf.mxu1 }
0x165d   :  { %4930 = vmatpush3.msra.mxu0 %v3368_v28  ;;  %v3472_v24 = vmul.f32 3.25, %v6270_v57 }
0x165e   :  { %4931 = vmatprep.subr.mxu0 %v5089_v3 }
0x165f   :  { %4932 = vmatpush3.msra.mxu0 %v3367_v61 }
0x1660   :  { %4933 = vmatprep.subr.mxu0 %v5089_v3 }
0x1661   :  { %4934 = vmatpush3.msra.mxu0 %v3366_v26 }
0x1662   :  { %4935 = vmatprep.subr.mxu0 %v5089_v3 }
0x1663   :  { %4936 = vmatpush3.msra.mxu0 %v3365_v22  ;;  %v3470_v22 = vmul.f32 3.25, %v6280_v43 }
0x1664   :  { %4937 = vmatprep.subr.mxu0 %v5089_v3 }
0x1665   :  { %4938 = vmatpush3.msra.mxu0 %v3364_v27 }
0x1666   :  { %4940 = vmatmul.mubr.msk.f32.vlgmr.msra.gmra.mxu0 %vm492_vm4, %v6310_v36  ;;  %4979 = vmatprep.subr.mxu0 %v5089_v3  ;;  %v5085_v36 = vld [vmem:[%s6500_s2 + $0x18] sm:$0xff] }
0x1667   :  { %4942 = vmatprep.mubr.msk.f32.mxu0 %vm5090_vm1, %v5089_v3 }
0x166a   :  { %4943 = vmatmul.mubr.msk.f32.gmra.mxu0 %vm492_vm4, %v6312_v20 }
0x166b   :  { %4945 = vmatprep.mubr.msk.f32.mxu0 %vm5090_vm1, %v5089_v3 }
0x166e   :  { %4946 = vmatmul.mubr.msk.f32.gmra.mxu0 %vm492_vm4, %v6314_v50  ;;  %v5084_v50 = vld [vmem:[%s6500_s2 + $0x20] sm:$0xff] }
0x166f   :  { %4948 = vmatprep.mubr.msk.f32.mxu0 %vm5090_vm1, %v5089_v3  ;;  %v6393_v20 = vmul.f32 %v5084_v50, %v5568_v33  ;;  %v5086_v33 = vld [vmem:[%s6500_s2 + $0x10] sm:$0xff] }
0x1670   :  { %v969_v12 = vmul.f32 %v5086_v33, %v5564_v29  ;;  %v5088_v29 = vld [vmem:[%s6500_s2] sm:$0xff] }
0x1671   :  { %v967_v42 = vmul.f32 %v5088_v29, %v5548_v2 }
0x1672   :  { %4949 = vmatmul.mubr.msk.f32.gmra.mxu0 %vm492_vm4, %v6316_v5  ;;  %v6402_v5 = vmul.f32 %v5085_v36, %v5566_v30  ;;  %v5087_v30 = vld [vmem:[%s6500_s2 + $0x8] sm:$0xff] }
0x1673   :  { %4951 = vmatprep.mubr.msk.f32.mxu0 %vm5090_vm1, %v5089_v3 }
0x1676   :  { %4952 = vmatmul.mubr.msk.f32.gmra.mxu0 %vm492_vm4, %v6318_v49  ;;  %v968_v49 = vmul.f32 %v5087_v30, %v5550_v9 }
0x1677   :  { %4989 = vmatprep.mubr.msk.f32.mxu0 %vm5090_vm1, %v5089_v3 }
0x1726   :  { %v3440_v31 = vpop.f32.mrf.mxu0 }
0x1727   :  { %v3464_v63 = vsub.f32 %v3369_v6, %v3440_v31 }
0x1728   :  { %v4941_v32 = vpop.f32.mrf.mxu0 }
0x1729   :  { %v815_v32 = vlaneseq }
0x172a   :  { %v3445_v46 = vpop.f32.mrf.mxu0 }
0x172b   :  { %v3465_v39 = vsub.f32 %v3370_v15, %v3445_v46  ;;  %v816_v46 = vshrl.u32 %v815_v32, 7 }
0x172c   :  { %v4944_v14 = vpop.f32.mrf.mxu0 }
0x172d   :  { %v833_v14 = vsub.s32 0, %v816_v46 }
0x172e   :  { %v3450_v35 = vpop.f32.mrf.mxu0 }
0x172f   :  { %v3466_v13 = vsub.f32 %v3371_v55, %v3450_v35  ;;  %v824_v35 = vrot.slane %v5185_v21, 7 }
0x1730   :  { %v4947_v38 = vpop.f32.mrf.mxu0 }
0x1731   :  { %v817_v38 = vsub.s32 1, %v816_v46 }
0x1732   :  { %v3455_v8 = vpop.f32.mrf.mxu0 }
0x1733   :  { %v3467_v10 = vsub.f32 %v3372_v40, %v3455_v8  ;;  %v852_v8 = vsub.s32 2, %v816_v46  ;;  %v825_v40 = vrot.slane %v5189_v23, 7 }
0x1734   :  { %v4950_v45 = vpop.f32.mrf.mxu0 }
0x1735   :  { %v844_v45 = vrot.slane %v5189_v23, 1  ;;  %v826_v6 = vsel %vm168_vm2, %v824_v35, %v825_v40 }
0x1736   :  { %v3460_v44 = vpop.f32.mrf.mxu0 }
0x1737   :  { %v3468_v60 = vsub.f32 %v3373_v52, %v3460_v44  ;;  %v39_v52 = vld [vmem:[%s6500_s2 + $0xc8] sm:$0xff] }
0x1738   :  { %v4953_v37 = vpop.f32.mrf.mxu0  ;;  %v834_v44 = vrot.slane %v39_v52, %v833_v14  ;;  %v853_v55 = vrot.slane %v39_v52, %v852_v8 }
0x1739   :  { %4955 = vmatpush3.msra.mxu1 %v3468_v60  ;;  %v830_v60 = vsel %vm168_vm2, 0.0, %v824_v35  ;;  %v818_v37 = vrot.slane %v39_v52, %v817_v38 }
0x173a   :  { %4956 = vmatprep.subr.mxu1 %v5089_v3  ;;  %v836_v36 = vmul.f32 %v834_v44, %v826_v6 }
0x173b   :  { %4957 = vmatpush3.msra.mxu1 %v3467_v10  ;;  %v846_v10 = vrot.slane %v5322_v58, 1 }
0x173c   :  { %4958 = vmatprep.subr.mxu1 %v5089_v3 }
0x173d   :  { %4959 = vmatpush3.msra.mxu1 %v3466_v13  ;;  %v835_v13 = vmul.f32 %v834_v44, %v830_v60  ;;  %v847_v50 = vsel %vm842_vm6, %v844_v45, %v846_v10 }
0x173e   :  { %4960 = vmatprep.subr.mxu1 %v5089_v3  ;;  %v855_v30 = vmul.f32 %v853_v55, %v847_v50 }
0x173f   :  { %4961 = vmatpush3.msra.mxu1 %v3465_v39  ;;  %v819_v39 = vmul.f32 %v818_v37, %v5185_v21 }
0x1740   :  { %4962 = vmatprep.subr.mxu1 %v5089_v3 }
0x1741   :  { %4963 = vmatpush3.msra.mxu1 %v3464_v63 }
0x1742   :  { %4965 = vmatmul.mubr.msk.f32.vlgmr.msra.gmra.mxu1 %vm492_vm4, %v6284_v19  ;;  %5017 = vmatprep.subr.mxu1 %v5089_v3 }
0x1743   :  { %5022 = vmatpush3.msra.mxu1 %v6393_v20  ;;  %4967 = vmatprep.mubr.msk.f32.mxu1 %vm5090_vm1, %v5089_v3 }
0x1744   :  { %5018 = vmatprep.subr.mxu1 %v5089_v3 }
0x1745   :  { %5023 = vmatpush3.msra.mxu1 %v6402_v5 }
0x1746   :  { %4968 = vmatmul.mubr.msk.f32.gmra.mxu1 %vm492_vm4, %v6280_v43  ;;  %5019 = vmatprep.subr.mxu1 %v5089_v3 }
0x1747   :  { %5024 = vmatpush3.msra.mxu1 %v969_v12  ;;  %4970 = vmatprep.mubr.msk.f32.mxu1 %vm5090_vm1, %v5089_v3 }
0x1748   :  { %5020 = vmatprep.subr.mxu1 %v5089_v3 }
0x1749   :  { %5025 = vmatpush3.msra.mxu1 %v968_v49 }
0x174a   :  { %4971 = vmatmul.mubr.msk.f32.gmra.mxu1 %vm492_vm4, %v6275_v62  ;;  %5021 = vmatprep.subr.mxu1 %v5089_v3 }
0x174b   :  { %5026 = vmatpush3.msra.mxu1 %v967_v42  ;;  %4973 = vmatprep.mubr.msk.f32.mxu1 %vm5090_vm1, %v5089_v3 }
0x174e   :  { %4974 = vmatmul.mubr.msk.f32.gmra.mxu1 %vm492_vm4, %v6270_v57 }
0x174f   :  { %4976 = vmatprep.mubr.msk.f32.mxu1 %vm5090_vm1, %v5089_v3 }
0x1752   :  { %4977 = vmatmul.mubr.msk.f32.gmra.mxu1 %vm492_vm4, %v6267_v4  ;;  %v3469_v4 = vmul.f32 3.25, %v6284_v19 }
0x1753   :  { %5011 = vmatprep.mubr.msk.f32.mxu1 %vm5090_vm1, %v5089_v3 }
0x1802   :  { %v3555_v2 = vpop.f32.mrf.mxu1 }
0x1803   :  { %v3579_v34 = vmul.f32 0.25, %v3555_v2  ;;  %v837_v2 = vmul.f32 %v834_v44, %v825_v40 }
0x1804   :  { %v4966_v9 = vpop.f32.mrf.mxu1 }
0x1805   :  { %v3584_v57 = vsub.f32 %v3469_v4, %v3579_v34 }
0x1806   :  { %v3560_v47 = vpop.f32.mrf.mxu1 }
0x1807   :  { %v3580_v61 = vmul.f32 0.25, %v3560_v47 }
0x1808   :  { %v4969_v7 = vpop.f32.mrf.mxu1 }
0x1809   :  { %v3585_v31 = vsub.f32 %v3470_v22, %v3580_v61 }
0x180a   :  { %v3565_v17 = vpop.f32.mrf.mxu1 }
0x180b   :  { %v3581_v28 = vmul.f32 0.25, %v3565_v17 }
0x180c   :  { %v4972_v56 = vpop.f32.mrf.mxu1 }
0x180d   :  { %v3586_v27 = vsub.f32 %v3471_v16, %v3581_v28 }
0x180e   :  { %v3570_v41 = vpop.f32.mrf.mxu1 }
0x180f   :  { %v3582_v18 = vmul.f32 0.25, %v3570_v41 }
0x1810   :  { %v4975_v11 = vpop.f32.mrf.mxu1 }
0x1811   :  { %v3587_v26 = vsub.f32 %v3472_v24, %v3582_v18 }
0x1812   :  { %v3575_v54 = vpop.f32.mrf.mxu1 }
0x1813   :  { %v3583_v0 = vmul.f32 0.25, %v3575_v54 }
0x1814   :  { %v4978_v25 = vpop.f32.mrf.mxu1 }
0x1815   :  { %v3588_v59 = vsub.f32 %v3473_v1, %v3583_v0 }
0x1817   :  { %4980 = vmatpush3.msra.mxu0 %v3588_v59 }
0x1818   :  { %4981 = vmatprep.subr.mxu0 %v5089_v3 }
0x1819   :  { %4982 = vmatpush3.msra.mxu0 %v3587_v26 }
0x181a   :  { %4983 = vmatprep.subr.mxu0 %v5089_v3 }
0x181b   :  { %4984 = vmatpush3.msra.mxu0 %v3586_v27 }
0x181c   :  { %4985 = vmatprep.subr.mxu0 %v5089_v3 }
0x181d   :  { %4986 = vmatpush3.msra.mxu0 %v3585_v31 }
0x181e   :  { %4987 = vmatprep.subr.mxu0 %v5089_v3 }
0x181f   :  { %4988 = vmatpush3.msra.mxu0 %v3584_v57 }
0x1820   :  { %4990 = vmatmul.mubr.msk.f32.vlgmr.msra.gmra.mxu0 %vm492_vm4, %v5632_v48  ;;  %4998 = vmatprep.subr.mxu0 %v5089_v3 }
0x1821   :  { %4999 = vmatpush3.msra.mxu0 %v6393_v20  ;;  %4992 = vmatprep.mubr.msk.f32.mxu0 %vm5090_vm1, %v5089_v3  ;;  %v838_v20 = vadd.f32 %v835_v13, %v819_v39 }
0x1822   :  { %5000 = vmatprep.subr.mxu0 %v5089_v3 }
0x1823   :  { %5001 = vmatpush3.msra.mxu0 %v6402_v5  ;;  %v821_v5 = vmul.f32 %v818_v37, %v5322_v58 }
0x1824   :  { %4993 = vmatmul.mubr.msk.f32.gmra.mxu0 %vm492_vm4, %v5634_v51  ;;  %5002 = vmatprep.subr.mxu0 %v5089_v3 }
0x1825   :  { %5003 = vmatpush3.msra.mxu0 %v969_v12  ;;  %4995 = vmatprep.mubr.msk.f32.mxu0 %vm5090_vm1, %v5089_v3  ;;  %v820_v12 = vmul.f32 %v818_v37, %v5189_v23  ;;  %v840_v17 = vadd.f32 %v837_v2, %v821_v5 }
0x1826   :  { %5004 = vmatprep.subr.mxu0 %v5089_v3 }
0x1827   :  { %5005 = vmatpush3.msra.mxu0 %v968_v49 }
0x1828   :  { %4996 = vmatmul.mubr.msk.f32.gmra.mxu0 %vm492_vm4, %v5636_v53  ;;  %5006 = vmatprep.subr.mxu0 %v5089_v3 }
0x1829   :  { %5007 = vmatpush3.msra.mxu0 %v967_v42  ;;  %5008 = vmatprep.mubr.msk.f32.mxu0 %vm5090_vm1, %v5089_v3  ;;  %v839_v42 = vadd.f32 %v836_v36, %v820_v12 }
0x182b   :  { %v858_v7 = vadd.f32 %v855_v30, %v839_v42 }
0x18e0   :  { %v3664_v48 = vpop.f32.mrf.mxu0 }
0x18e1   :  { %5009 = vmatmul.mubr.msk.f32.vlgmr.msra.gmra.mxu0 %vm492_vm4, %v3664_v48 }
0x18e2   :  { %v4991_v51 = vpop.f32.mrf.mxu0 }
0x18e4   :  { %v3669_v62 = vpop.f32.mrf.mxu0 }
0x18e5   :  { %5012 = vmatmul.mubr.msk.f32.vlgmr.msra.gmra.mxu1 %vm492_vm4, %v3669_v62 }
0x18e6   :  { %v4994_v43 = vpop.f32.mrf.mxu0  ;;  %5014 = vmatprep.mubr.msk.f32.mxu1 %vm5090_vm1, %v5089_v3  ;;  %v843_v3 = vrot.slane %v5185_v21, 1  ;;  %v856_v21 = vmul.f32 0.0, %v853_v55 }
0x18e8   :  { %v3674_v19 = vpop.f32.mrf.mxu0  ;;  %v845_v15 = vsel %vm842_vm6, %v843_v3, %v844_v45  ;;  %v859_v11 = vadd.f32 %v856_v21, %v840_v17 }
0x18e9   :  { %5015 = vmatmul.mubr.msk.f32.gmra.mxu1 %vm492_vm4, %v3674_v19  ;;  %v854_v63 = vmul.f32 %v853_v55, %v845_v15 }
0x18ea   :  { %v4997_v53 = vpop.f32.mrf.mxu0 }
0x18eb   :  { %v857_v33 = vadd.f32 %v854_v63, %v838_v20 }
0x19a1   :  { %v3753_v49 = vpop.f32.mrf.mxu0 }
0x19a2   :  { %v3754_v29 = vadd.f32 %v3753_v49, %v857_v33 }
0x19a3   :  { %v5010_v9 = vpop.f32.mrf.mxu0 }
0x19a4   :  { %v3767_v47 = vsel %vm59_vm0, %v3754_v29, 0.0 }
0x19a5   :  { %3770 = vst [vmem:[%s6501_s3] sm:$0xff] %v3767_v47  ;;  %v3758_v56 = vpop.f32.mrf.mxu1 }
0x19a6   :  { %v3759_v58 = vadd.f32 %v3758_v56, %v858_v7 }
0x19a7   :  { %v5013_v41 = vpop.f32.mrf.mxu1 }
0x19a8   :  { %v3768_v23 = vsel %vm59_vm0, %v3759_v58, 0.0 }
0x19a9   :  { %3771 = vst [vmem:[%s6501_s3 + $0x8] sm:$0xff] %v3768_v23  ;;  %v3763_v54 = vpop.f32.mrf.mxu1 }
0x19aa   :  { %v3764_v18 = vadd.f32 %v3763_v54, %v859_v11 }
0x19ab   :  { %v5016_v1 = vpop.f32.mrf.mxu1 }
0x19ac   :  { %v3769_v0 = vsel %vm59_vm0, %v3764_v18, 0.0 }
0x19ad   :  { %3772 = vst [vmem:[%s6501_s3 + $0x10] sm:$0x1] %v3769_v0 }

</bundles_post_ra>
